<compile_context>
chip_gen: v7x
topology: tpu7x:2x2x1
jax: 0.10.0
libtpu: 0.0.40
codegen_flags: <defaults>
</compile_context>

<pallas_src>
import math

import jax
import jax.numpy as jnp
from jax import lax
from jax.experimental import pallas as pl
from jax.experimental.pallas import tpu as pltpu


def _pick_tile(n, pref):
    """Largest tile <= pref that divides n and is a multiple of 128; else n."""
    if n <= pref:
        return n
    t = (min(pref, n) // 128) * 128
    while t >= 128:
        if n % t == 0:
            return t
        t -= 128
    return n


# --------------------------------------------------------------------------- #
# Kernel 1: per (batch, query-stripe) kNN + edge conv, streaming max/min + BN sums
# --------------------------------------------------------------------------- #
def make_graph_conv_kernel(C, N, TQ, K, E):
    unroll = True if K <= 8 else 4          # partial unroll for DGCNN-typical K=20..40

    def kernel(xq_ref, xf_ref, w1_ref, w21_ref,
               maxo_ref, mino_ref, sum_ref, sq_ref):
        xq = xq_ref[0]                      # (C, TQ)  query stripe of this grid cell
        xf = xf_ref[0]                      # (C, N)   all points (neighbor candidates)
        w1 = w1_ref[...]                    # (C, E)   applied to (neighbor - center)
        w21 = w21_ref[...]                  # (C, E)   = w2 - w1 (applied to center)

        cdims = (((0,), (0,)), ((), ()))    # contract the C axis directly (no transpose)
        # Rank-equivalent kNN key: 2*<x_q, x_m> - ||x_m||^2 (row constant dropped).
        inner = lax.dot_general(xq, xf, cdims, preferred_element_type=jnp.float32)
        xx = jnp.sum(xf * xf, axis=0, keepdims=True)                     # (1, N)
        d0 = 2.0 * inner - xx                                            # (TQ, N)

        # Conv hoisted out of the K loop:
        #   conv_t = (nbr - ctr) @ w1 + ctr @ w2 = onehot @ (xf^T w1) + xq^T (w2 - w1)
        p1 = lax.dot_general(xf, w1, cdims, preferred_element_type=jnp.float32)   # (N, E)
        base = lax.dot_general(xq, w21, cdims, preferred_element_type=jnp.float32)  # (TQ,E)

        iota_f = lax.broadcasted_iota(jnp.int32, (TQ, N), 1).astype(jnp.float32)

        def body(_, carry):
            d, mx, mn, ss, sq = carry
            # exact first-argmax (torch-style tie break): max + masked index min
            m = jnp.max(d, axis=1, keepdims=True)                        # (TQ, 1)
            cand = jnp.where(d >= m, iota_f, float(N))
            idx = jnp.min(cand, axis=1, keepdims=True)                   # (TQ, 1)
            sel = iota_f == idx
            conv_t = jnp.dot(sel.astype(jnp.float32), p1,
                             preferred_element_type=jnp.float32) + base  # (TQ, E)
            return (jnp.where(sel, -1e30, d),
                    jnp.maximum(mx, conv_t),
                    jnp.minimum(mn, conv_t),
                    ss + jnp.sum(conv_t, axis=0, keepdims=True),
                    sq + jnp.sum(conv_t * conv_t, axis=0, keepdims=True))

        init = (d0,
                jnp.full((TQ, E), -1e30, jnp.float32),
                jnp.full((TQ, E), 1e30, jnp.float32),
                jnp.zeros((1, E), jnp.float32),
                jnp.zeros((1, E), jnp.float32))
        _, mx, mn, ss, sq = lax.fori_loop(0, K, body, init, unroll=unroll)

        maxo_ref[0] = mx                    # (TQ, E) running max over the K neighbors
        mino_ref[0] = mn                    # (TQ, E) running min over the K neighbors
        # BN partial sums, padded to an (8, E) sublane-aligned block (row 0 is the sum).
        row = lax.broadcasted_iota(jnp.int32, (8, E), 0)
        sum_ref[0] = jnp.where(row == 0, ss, 0.0)
        sq_ref[0] = jnp.where(row == 0, sq, 0.0)

    return kernel


# --------------------------------------------------------------------------- #
# Kernel 2: BN affine + LeakyReLU + max_k, multi-head attention (seq = B), residual
# --------------------------------------------------------------------------- #
def make_attention_kernel(B, TN, E, H):
    def kernel(maxs_ref, mins_ref, gs_ref, gb_ref,
               wqkvT_ref, bqkv_ref, woT_ref, bo_ref,
               sbd_ref, stbd_ref, ist_ref, out_ref):
        gs = gs_ref[...]                     # (1, E)
        gb = gb_ref[...]                     # (1, E)

        # BN affine + LeakyReLU + max over k, recovered from the streaming max/min
        # (BN is a per-channel affine, LeakyReLU is monotone).
        y = jnp.where(gs >= 0.0, maxs_ref[...], mins_ref[...]) * gs + gb   # (B, TN, E)
        y = jnp.where(y >= 0.0, y, 0.2 * y)

        # Fused q/k/v in-projection: one MXU pass over all B*TN rows.
        # (q columns/bias were pre-scaled by head_dim**-0.5 in the wrapper.)
        y2 = y.reshape(B * TN, E)
        qkv = jnp.dot(y2, wqkvT_ref[...],
                      preferred_element_type=jnp.float32) + bqkv_ref[...]   # (B*TN, 3E)

        q = [qkv[j * TN:(j + 1) * TN, 0:E] for j in range(B)]               # (TN, E) each
        kst = jnp.concatenate([qkv[j * TN:(j + 1) * TN, E:2 * E]
                               for j in range(B)], axis=1)                  # (TN, B*E)
        vst = jnp.concatenate([qkv[j * TN:(j + 1) * TN, 2 * E:3 * E]
                               for j in range(B)], axis=1)                  # (TN, B*E)

        sbd = sbd_ref[...]      # (B*E, B*H) block-diag head-sum
        stbd = stbd_ref[...]    # (B*H, B*E) block-diag head-expand
        ist = ist_ref[...]      # (B*E, E)   stacked identity (sum over j)
        woT = woT_ref[...]
        bo = bo_ref[...]

        for i in range(B):      # sequence length B is small & static; unrolled
            qt = jnp.concatenate([q[i]] * B, axis=1)                        # (TN, B*E)
            sraw = jnp.dot(qt * kst, sbd,
                           preferred_element_type=jnp.float32)              # (TN, B*H)
            # softmax over the j (sequence) blocks, per (point, head)
            m = sraw[:, 0:H]
            for j in range(1, B):
                m = jnp.maximum(m, sraw[:, j * H:(j + 1) * H])
            ex = jnp.exp(sraw - jnp.concatenate([m] * B, axis=1))
            den = ex[:, 0:H]
            for j in range(1, B):
                den = den + ex[:, j * H:(j + 1) * H]
            inv = pl.reciprocal(den, approx=True)          # EUP slot, ~1e-3 rel dev
            probs = ex * jnp.concatenate([inv] * B, axis=1)                 # (TN, B*H)
            aexp = jnp.dot(probs, stbd, preferred_element_type=jnp.float32)  # (TN, B*E)
            mixed = jnp.dot(aexp * vst, ist,
                            preferred_element_type=jnp.float32)             # (TN, E)
            attn = jnp.dot(mixed, woT, preferred_element_type=jnp.float32) + bo
            # channels-major store: lane axis = N (lane-dense for realistic N >= 128)
            out_ref[i] = jnp.transpose(attn + y[i])                         # (E, TN)

    return kernel


# --------------------------------------------------------------------------- #
# Wrapper
# --------------------------------------------------------------------------- #
def eblock_forward(x, params, k, att_heads):
    """x: (B, indim, N) float32 -> (B, outdim, N) float32 (matches PyTorch EBlock)."""
    B, C, N = x.shape
    E = params["conv_w"].shape[0]
    H = att_heads
    K = k
    HD = E // H
    assert K <= N, "k must be <= number of points"
    assert E % H == 0, "outdim must be divisible by att_heads"

    # VMEM budget: ~3/4 of physical VMEM (v7x ~48 MiB, v5e/v6e ~96 MiB), capped.
    try:
        cap = int(pltpu.get_tpu_info().vmem_capacity_bytes)
    except Exception:
        cap = 64 * 1024 * 1024
    vmem_limit = min(cap * 3 // 4, 100 * 1024 * 1024)

    # Query-stripe tile for kernel 1: keep 2*TQ*N*4 bytes (distance + iota) ~<= 12 MiB.
    tq_pref = max(128, min(512, ((12 << 20) // (8 * max(N, 1))) // 128 * 128))
    TQ = _pick_tile(N, tq_pref)
    NQT = N // TQ

    # --- parameter plumbing for the conv phase ---
    w = params["conv_w"]                          # (E, 2C), 1x1 conv, no bias
    w1 = jnp.transpose(w[:, :C])                  # (C, E)  for (neighbor - center)
    w21 = jnp.transpose(w[:, C:]) - w1            # (C, E)  = w2 - w1 (for center)

    flops1 = int(B * NQT * (2 * TQ * N * C + 2 * N * C * E + 2 * TQ * C * E
                            + K * (2 * TQ * N * E + 6 * TQ * N + 6 * TQ * E)))
    bytes1 = int(4 * (B * NQT * C * (TQ + N) + 2 * C * E
                      + 2 * B * N * E + 16 * B * NQT * E))

    maxo, mino, bsum, bsq = pl.pallas_call(
        make_graph_conv_kernel(C, N, TQ, K, E),
        grid=(B, NQT),
        in_specs=[pl.BlockSpec((1, C, TQ), lambda b, q: (b, 0, q)),   # query stripe
                  pl.BlockSpec((1, C, N), lambda b, q: (b, 0, 0)),    # all points
                  pl.BlockSpec((C, E), lambda b, q: (0, 0)),
                  pl.BlockSpec((C, E), lambda b, q: (0, 0))],
        out_specs=(pl.BlockSpec((1, TQ, E), lambda b, q: (b, q, 0)),
                   pl.BlockSpec((1, TQ, E), lambda b, q: (b, q, 0)),
                   pl.BlockSpec((1, 8, E), lambda b, q: (b, q, 0)),
                   pl.BlockSpec((1, 8, E), lambda b, q: (b, q, 0))),
        out_shape=(jax.ShapeDtypeStruct((B, N, E), jnp.float32),
                   jax.ShapeDtypeStruct((B, N, E), jnp.float32),
                   jax.ShapeDtypeStruct((B, 8 * NQT, E), jnp.float32),
                   jax.ShapeDtypeStruct((B, 8 * NQT, E), jnp.float32)),
        compiler_params=pltpu.CompilerParams(
            dimension_semantics=("parallel", "parallel"),
            vmem_limit_bytes=vmem_limit),
        cost_estimate=pl.CostEstimate(flops=flops1, transcendentals=0,
                                      bytes_accessed=bytes1),
    )(x, x, w1, w21)

    # --- BatchNorm2d training-mode batch stats, finalized on tiny (E,) vectors ---
    # TODO(synk): eval-mode BatchNorm (running statistics) is not implemented.
    cnt = float(B * N * K)
    mean = jnp.sum(bsum, axis=(0, 1)) / cnt
    var = jnp.maximum(jnp.sum(bsq, axis=(0, 1)) / cnt - mean * mean, 0.0)  # biased var
    rstd = lax.rsqrt(var + 1e-5)
    g_scale = (params["bn_gamma"] * rstd).reshape(1, E)
    g_bias = (params["bn_beta"] - mean * params["bn_gamma"] * rstd).reshape(1, E)

    # --- attention parameter plumbing (fused qkv, q pre-scaled) ---
    scale = 1.0 / math.sqrt(HD)
    in_w = params["in_proj_w"]                    # (3E, E)
    in_b = params["in_proj_b"]                    # (3E,)
    wqkvT = jnp.concatenate([jnp.transpose(in_w[:E]) * scale,
                             jnp.transpose(in_w[E:2 * E]),
                             jnp.transpose(in_w[2 * E:])], axis=1)       # (E, 3E)
    bqkv = jnp.concatenate([in_b[:E] * scale, in_b[E:]]).reshape(1, 3 * E)
    woT = jnp.transpose(params["out_proj_w"])     # (E, E)
    bo = params["out_proj_b"].reshape(1, E)

    # Block-diagonal head-sum / head-expand and stacked-identity matrices (built once).
    BE, BH = B * E, B * H
    r = jnp.arange(BE)[:, None]
    c = jnp.arange(BH)[None, :]
    sbd = (((r // E) == (c // H)) & (((r % E) // HD) == (c % H))).astype(jnp.float32)
    r2 = jnp.arange(BH)[:, None]
    c2 = jnp.arange(BE)[None, :]
    stbd = (((r2 // H) == (c2 // E)) & ((r2 % H) == ((c2 % E) // HD))).astype(jnp.float32)
    r3 = jnp.arange(BE)[:, None]
    c3 = jnp.arange(E)[None, :]
    ist = ((r3 % E) == c3).astype(jnp.float32)

    TN = _pick_tile(N, 256)
    NT = N // TN

    flops2 = int(6 * B * N * E * E + 4 * (B ** 3) * N * E * H
                 + 2 * (B ** 2) * N * E * E + 2 * B * N * E * E)
    trans2 = int((B ** 2) * N * H + B * N * H)
    bytes2 = int(4 * (3 * B * N * E + 4 * E * E + 2 * BE * BH + BE * E + 8 * E))

    out = pl.pallas_call(
        make_attention_kernel(B, TN, E, H),
        grid=(NT,),
        in_specs=[pl.BlockSpec((B, TN, E), lambda i: (0, i, 0)),
                  pl.BlockSpec((B, TN, E), lambda i: (0, i, 0)),
                  pl.BlockSpec((1, E), lambda i: (0, 0)),
                  pl.BlockSpec((1, E), lambda i: (0, 0)),
                  pl.BlockSpec((E, 3 * E), lambda i: (0, 0)),
                  pl.BlockSpec((1, 3 * E), lambda i: (0, 0)),
                  pl.BlockSpec((E, E), lambda i: (0, 0)),
                  pl.BlockSpec((1, E), lambda i: (0, 0)),
                  pl.BlockSpec((BE, BH), lambda i: (0, 0)),
                  pl.BlockSpec((BH, BE), lambda i: (0, 0)),
                  pl.BlockSpec((BE, E), lambda i: (0, 0))],
        out_specs=pl.BlockSpec((B, E, TN), lambda i: (0, 0, i)),
        out_shape=jax.ShapeDtypeStruct((B, E, N), jnp.float32),
        compiler_params=pltpu.CompilerParams(
            dimension_semantics=("parallel",),
            vmem_limit_bytes=vmem_limit),
        cost_estimate=pl.CostEstimate(flops=flops2, transcendentals=trans2,
                                      bytes_accessed=bytes2),
    )(maxo, mino, g_scale, g_bias, wqkvT, bqkv, woT, bo, sbd, stbd, ist)

    return out                                    # (B, outdim, N), channels-major


if __name__ == "__main__":
    B, indim, N = 2, 4, 16          # small point cloud: 2 clouds, 4 channels, 16 points
    outdim, att_heads, k = 32, 4, 8

    key = jax.random.PRNGKey(0)
    keys = jax.random.split(key, 8)
    x = jax.random.normal(keys[0], (B, indim, N), jnp.float32)

    # deterministic synthetic parameters (shapes from EBlock.__init__)
    params = {
        "conv_w": 0.1 * jax.random.normal(keys[1], (outdim, 2 * indim), jnp.float32),
        "bn_gamma": jnp.ones((outdim,), jnp.float32),
        "bn_beta": jnp.zeros((outdim,), jnp.float32),
        "in_proj_w": 0.1 * jax.random.normal(keys[2], (3 * outdim, outdim), jnp.float32),
        "in_proj_b": 0.1 * jax.random.normal(keys[3], (3 * outdim,), jnp.float32),
        "out_proj_w": 0.1 * jax.random.normal(keys[4], (outdim, outdim), jnp.float32),
        "out_proj_b": 0.1 * jax.random.normal(keys[5], (outdim,), jnp.float32),
    }

    y = eblock_forward(x, params, k, att_heads)
    jax.block_until_ready(y)
    assert y.shape == (B, outdim, N) and y.dtype == jnp.float32
    print("KERNEL_OK")
</pallas_src>

<mosaic_0001>
module attributes {stable_mosaic.version = 11 : i64} {
  func.func @kernel(%arg0: i32, %arg1: i32, %arg2: memref<1x4x16xf32, #tpu.memory_space<vmem>>, %arg3: memref<1x4x16xf32, #tpu.memory_space<vmem>>, %arg4: memref<4x32xf32, #tpu.memory_space<vmem>>, %arg5: memref<4x32xf32, #tpu.memory_space<vmem>>, %arg6: memref<1x16x32xf32, #tpu.memory_space<vmem>>, %arg7: memref<1x16x32xf32, #tpu.memory_space<vmem>>, %arg8: memref<1x8x32xf32, #tpu.memory_space<vmem>>, %arg9: memref<1x8x32xf32, #tpu.memory_space<vmem>>) attributes {dimension_semantics = [#tpu.dimension_semantics<parallel>, #tpu.dimension_semantics<parallel>], iteration_bounds = array<i64: 2, 1>, scalar_prefetch = 0 : i64, scratch_operands = 0 : i64, tpu.core_type = #tpu.core_type<tc>, window_params = [{transform_indices = @transform_0, window_bounds = array<i64: 1, 4, 16>}, {transform_indices = @transform_1, window_bounds = array<i64: 1, 4, 16>}, {pipeline_mode = #tpu.pipeline_mode<synchronous>, transform_indices = @transform_2, window_bounds = array<i64: 4, 32>}, {pipeline_mode = #tpu.pipeline_mode<synchronous>, transform_indices = @transform_3, window_bounds = array<i64: 4, 32>}, {transform_indices = @transform_4, window_bounds = array<i64: 1, 16, 32>}, {transform_indices = @transform_5, window_bounds = array<i64: 1, 16, 32>}, {transform_indices = @transform_6, window_bounds = array<i64: 1, 8, 32>}, {transform_indices = @transform_7, window_bounds = array<i64: 1, 8, 32>}]} {
    %c0 = arith.constant 0 : index
    %c0_0 = arith.constant 0 : index
    %c0_1 = arith.constant 0 : index
    %0 = vector.load %arg2[%c0, %c0_0, %c0_1] : memref<1x4x16xf32, #tpu.memory_space<vmem>>, vector<1x4x16xf32>
    %1 = vector.shape_cast %0 : vector<1x4x16xf32> to vector<4x16xf32>
    %c0_2 = arith.constant 0 : index
    %c0_3 = arith.constant 0 : index
    %c0_4 = arith.constant 0 : index
    %2 = vector.load %arg3[%c0_2, %c0_3, %c0_4] : memref<1x4x16xf32, #tpu.memory_space<vmem>>, vector<1x4x16xf32>
    %3 = vector.shape_cast %2 : vector<1x4x16xf32> to vector<4x16xf32>
    %c0_5 = arith.constant 0 : index
    %c0_6 = arith.constant 0 : index
    %4 = vector.load %arg4[%c0_5, %c0_6] : memref<4x32xf32, #tpu.memory_space<vmem>>, vector<4x32xf32>
    %c0_7 = arith.constant 0 : index
    %c0_8 = arith.constant 0 : index
    %5 = vector.load %arg5[%c0_7, %c0_8] : memref<4x32xf32, #tpu.memory_space<vmem>>, vector<4x32xf32>
    %cst = arith.constant dense<0.000000e+00> : vector<16x16xf32>
    %6 = tpu.matmul %1, %3, %cst {dimension_numbers = #tpu.dot_dimension_numbers<[0], [0], [1], [1], [0, 1, 1, 1], [], []>} : vector<4x16xf32>, vector<4x16xf32>, vector<16x16xf32> -> vector<16x16xf32>
    %7 = arith.mulf %3, %3 : vector<4x16xf32>
    %cst_9 = arith.constant dense<0.000000e+00> : vector<16xf32>
    %8 = vector.multi_reduction <add>, %7, %cst_9 [0] : vector<4x16xf32> to vector<16xf32>
    %9 = vector.shape_cast %8 : vector<16xf32> to vector<1x16xf32>
    %cst_10 = arith.constant 2.000000e+00 : f32
    %10 = vector.broadcast %cst_10 : f32 to vector<16x16xf32>
    %11 = arith.mulf %10, %6 : vector<16x16xf32>
    %12 = vector.broadcast %9 : vector<1x16xf32> to vector<16x16xf32>
    %13 = arith.subf %11, %12 : vector<16x16xf32>
    %cst_11 = arith.constant dense<0.000000e+00> : vector<16x32xf32>
    %14 = tpu.matmul %3, %4, %cst_11 {dimension_numbers = #tpu.dot_dimension_numbers<[0], [0], [1], [1], [0, 1, 1, 1], [], []>} : vector<4x16xf32>, vector<4x32xf32>, vector<16x32xf32> -> vector<16x32xf32>
    %cst_12 = arith.constant dense<0.000000e+00> : vector<16x32xf32>
    %15 = tpu.matmul %1, %5, %cst_12 {dimension_numbers = #tpu.dot_dimension_numbers<[0], [0], [1], [1], [0, 1, 1, 1], [], []>} : vector<4x16xf32>, vector<4x32xf32>, vector<16x32xf32> -> vector<16x32xf32>
    %16 = tpu.iota {dimensions = array<i32: 1>} : vector<16x16xi32>
    %17 = arith.sitofp %16 : vector<16x16xi32> to vector<16x16xf32>
    %cst_13 = arith.constant -1.000000e+30 : f32
    %18 = vector.broadcast %cst_13 : f32 to vector<16x32xf32>
    %cst_14 = arith.constant 1.000000e+30 : f32
    %19 = vector.broadcast %cst_14 : f32 to vector<16x32xf32>
    %cst_15 = arith.constant 0.000000e+00 : f32
    %20 = vector.broadcast %cst_15 : f32 to vector<1x32xf32>
    %cst_16 = arith.constant 0.000000e+00 : f32
    %21 = vector.broadcast %cst_16 : f32 to vector<1x32xf32>
    %c0_i32 = arith.constant 0 : i32
    %cst_17 = arith.constant dense<0xFF800000> : vector<16xf32>
    %22 = vector.multi_reduction <maximumf>, %13, %cst_17 [1] : vector<16x16xf32> to vector<16xf32>
    %23 = vector.shape_cast %22 : vector<16xf32> to vector<16x1xf32>
    %24 = vector.broadcast %23 : vector<16x1xf32> to vector<16x16xf32>
    %25 = arith.cmpf oge, %13, %24 : vector<16x16xf32>
    %cst_18 = arith.constant 1.600000e+01 : f32
    %26 = vector.broadcast %cst_18 : f32 to vector<16x16xf32>
    %27 = arith.select %25, %17, %26 : vector<16x16xi1>, vector<16x16xf32>
    %cst_19 = arith.constant dense<0x7F800000> : vector<16xf32>
    %28 = vector.multi_reduction <minimumf>, %27, %cst_19 [1] : vector<16x16xf32> to vector<16xf32>
    %29 = vector.shape_cast %28 : vector<16xf32> to vector<16x1xf32>
    %30 = vector.broadcast %29 : vector<16x1xf32> to vector<16x16xf32>
    %31 = arith.cmpf oeq, %17, %30 : vector<16x16xf32>
    %32 = arith.extui %31 : vector<16x16xi1> to vector<16x16xi32>
    %33 = arith.sitofp %32 : vector<16x16xi32> to vector<16x16xf32>
    %cst_20 = arith.constant dense<0.000000e+00> : vector<16x32xf32>
    %34 = tpu.matmul %33, %14, %cst_20 {dimension_numbers = #tpu.dot_dimension_numbers<[1], [0], [0], [1], [0, 0, 1, 1], [], []>} : vector<16x16xf32>, vector<16x32xf32>, vector<16x32xf32> -> vector<16x32xf32>
    %35 = arith.addf %34, %15 : vector<16x32xf32>
    %cst_21 = arith.constant -1.000000e+30 : f32
    %36 = vector.broadcast %cst_21 : f32 to vector<16x16xf32>
    %37 = arith.select %31, %36, %13 : vector<16x16xi1>, vector<16x16xf32>
    %38 = arith.maximumf %18, %35 : vector<16x32xf32>
    %39 = arith.minimumf %19, %35 : vector<16x32xf32>
    %cst_22 = arith.constant dense<0.000000e+00> : vector<32xf32>
    %40 = vector.multi_reduction <add>, %35, %cst_22 [0] : vector<16x32xf32> to vector<32xf32>
    %41 = vector.shape_cast %40 : vector<32xf32> to vector<1x32xf32>
    %42 = arith.addf %20, %41 : vector<1x32xf32>
    %43 = arith.mulf %35, %35 : vector<16x32xf32>
    %cst_23 = arith.constant dense<0.000000e+00> : vector<32xf32>
    %44 = vector.multi_reduction <add>, %43, %cst_23 [0] : vector<16x32xf32> to vector<32xf32>
    %45 = vector.shape_cast %44 : vector<32xf32> to vector<1x32xf32>
    %46 = arith.addf %21, %45 : vector<1x32xf32>
    %c1_i32 = arith.constant 1 : i32
    %cst_24 = arith.constant dense<0xFF800000> : vector<16xf32>
    %47 = vector.multi_reduction <maximumf>, %37, %cst_24 [1] : vector<16x16xf32> to vector<16xf32>
    %48 = vector.shape_cast %47 : vector<16xf32> to vector<16x1xf32>
    %49 = vector.broadcast %48 : vector<16x1xf32> to vector<16x16xf32>
    %50 = arith.cmpf oge, %37, %49 : vector<16x16xf32>
    %cst_25 = arith.constant 1.600000e+01 : f32
    %51 = vector.broadcast %cst_25 : f32 to vector<16x16xf32>
    %52 = arith.select %50, %17, %51 : vector<16x16xi1>, vector<16x16xf32>
    %cst_26 = arith.constant dense<0x7F800000> : vector<16xf32>
    %53 = vector.multi_reduction <minimumf>, %52, %cst_26 [1] : vector<16x16xf32> to vector<16xf32>
    %54 = vector.shape_cast %53 : vector<16xf32> to vector<16x1xf32>
    %55 = vector.broadcast %54 : vector<16x1xf32> to vector<16x16xf32>
    %56 = arith.cmpf oeq, %17, %55 : vector<16x16xf32>
    %57 = arith.extui %56 : vector<16x16xi1> to vector<16x16xi32>
    %58 = arith.sitofp %57 : vector<16x16xi32> to vector<16x16xf32>
    %cst_27 = arith.constant dense<0.000000e+00> : vector<16x32xf32>
    %59 = tpu.matmul %58, %14, %cst_27 {dimension_numbers = #tpu.dot_dimension_numbers<[1], [0], [0], [1], [0, 0, 1, 1], [], []>} : vector<16x16xf32>, vector<16x32xf32>, vector<16x32xf32> -> vector<16x32xf32>
    %60 = arith.addf %59, %15 : vector<16x32xf32>
    %cst_28 = arith.constant -1.000000e+30 : f32
    %61 = vector.broadcast %cst_28 : f32 to vector<16x16xf32>
    %62 = arith.select %56, %61, %37 : vector<16x16xi1>, vector<16x16xf32>
    %63 = arith.maximumf %38, %60 : vector<16x32xf32>
    %64 = arith.minimumf %39, %60 : vector<16x32xf32>
    %cst_29 = arith.constant dense<0.000000e+00> : vector<32xf32>
    %65 = vector.multi_reduction <add>, %60, %cst_29 [0] : vector<16x32xf32> to vector<32xf32>
    %66 = vector.shape_cast %65 : vector<32xf32> to vector<1x32xf32>
    %67 = arith.addf %42, %66 : vector<1x32xf32>
    %68 = arith.mulf %60, %60 : vector<16x32xf32>
    %cst_30 = arith.constant dense<0.000000e+00> : vector<32xf32>
    %69 = vector.multi_reduction <add>, %68, %cst_30 [0] : vector<16x32xf32> to vector<32xf32>
    %70 = vector.shape_cast %69 : vector<32xf32> to vector<1x32xf32>
    %71 = arith.addf %46, %70 : vector<1x32xf32>
    %c2_i32 = arith.constant 2 : i32
    %cst_31 = arith.constant dense<0xFF800000> : vector<16xf32>
    %72 = vector.multi_reduction <maximumf>, %62, %cst_31 [1] : vector<16x16xf32> to vector<16xf32>
    %73 = vector.shape_cast %72 : vector<16xf32> to vector<16x1xf32>
    %74 = vector.broadcast %73 : vector<16x1xf32> to vector<16x16xf32>
    %75 = arith.cmpf oge, %62, %74 : vector<16x16xf32>
    %cst_32 = arith.constant 1.600000e+01 : f32
    %76 = vector.broadcast %cst_32 : f32 to vector<16x16xf32>
    %77 = arith.select %75, %17, %76 : vector<16x16xi1>, vector<16x16xf32>
    %cst_33 = arith.constant dense<0x7F800000> : vector<16xf32>
    %78 = vector.multi_reduction <minimumf>, %77, %cst_33 [1] : vector<16x16xf32> to vector<16xf32>
    %79 = vector.shape_cast %78 : vector<16xf32> to vector<16x1xf32>
    %80 = vector.broadcast %79 : vector<16x1xf32> to vector<16x16xf32>
    %81 = arith.cmpf oeq, %17, %80 : vector<16x16xf32>
    %82 = arith.extui %81 : vector<16x16xi1> to vector<16x16xi32>
    %83 = arith.sitofp %82 : vector<16x16xi32> to vector<16x16xf32>
    %cst_34 = arith.constant dense<0.000000e+00> : vector<16x32xf32>
    %84 = tpu.matmul %83, %14, %cst_34 {dimension_numbers = #tpu.dot_dimension_numbers<[1], [0], [0], [1], [0, 0, 1, 1], [], []>} : vector<16x16xf32>, vector<16x32xf32>, vector<16x32xf32> -> vector<16x32xf32>
    %85 = arith.addf %84, %15 : vector<16x32xf32>
    %cst_35 = arith.constant -1.000000e+30 : f32
    %86 = vector.broadcast %cst_35 : f32 to vector<16x16xf32>
    %87 = arith.select %81, %86, %62 : vector<16x16xi1>, vector<16x16xf32>
    %88 = arith.maximumf %63, %85 : vector<16x32xf32>
    %89 = arith.minimumf %64, %85 : vector<16x32xf32>
    %cst_36 = arith.constant dense<0.000000e+00> : vector<32xf32>
    %90 = vector.multi_reduction <add>, %85, %cst_36 [0] : vector<16x32xf32> to vector<32xf32>
    %91 = vector.shape_cast %90 : vector<32xf32> to vector<1x32xf32>
    %92 = arith.addf %67, %91 : vector<1x32xf32>
    %93 = arith.mulf %85, %85 : vector<16x32xf32>
    %cst_37 = arith.constant dense<0.000000e+00> : vector<32xf32>
    %94 = vector.multi_reduction <add>, %93, %cst_37 [0] : vector<16x32xf32> to vector<32xf32>
    %95 = vector.shape_cast %94 : vector<32xf32> to vector<1x32xf32>
    %96 = arith.addf %71, %95 : vector<1x32xf32>
    %c3_i32 = arith.constant 3 : i32
    %cst_38 = arith.constant dense<0xFF800000> : vector<16xf32>
    %97 = vector.multi_reduction <maximumf>, %87, %cst_38 [1] : vector<16x16xf32> to vector<16xf32>
    %98 = vector.shape_cast %97 : vector<16xf32> to vector<16x1xf32>
    %99 = vector.broadcast %98 : vector<16x1xf32> to vector<16x16xf32>
    %100 = arith.cmpf oge, %87, %99 : vector<16x16xf32>
    %cst_39 = arith.constant 1.600000e+01 : f32
    %101 = vector.broadcast %cst_39 : f32 to vector<16x16xf32>
    %102 = arith.select %100, %17, %101 : vector<16x16xi1>, vector<16x16xf32>
    %cst_40 = arith.constant dense<0x7F800000> : vector<16xf32>
    %103 = vector.multi_reduction <minimumf>, %102, %cst_40 [1] : vector<16x16xf32> to vector<16xf32>
    %104 = vector.shape_cast %103 : vector<16xf32> to vector<16x1xf32>
    %105 = vector.broadcast %104 : vector<16x1xf32> to vector<16x16xf32>
    %106 = arith.cmpf oeq, %17, %105 : vector<16x16xf32>
    %107 = arith.extui %106 : vector<16x16xi1> to vector<16x16xi32>
    %108 = arith.sitofp %107 : vector<16x16xi32> to vector<16x16xf32>
    %cst_41 = arith.constant dense<0.000000e+00> : vector<16x32xf32>
    %109 = tpu.matmul %108, %14, %cst_41 {dimension_numbers = #tpu.dot_dimension_numbers<[1], [0], [0], [1], [0, 0, 1, 1], [], []>} : vector<16x16xf32>, vector<16x32xf32>, vector<16x32xf32> -> vector<16x32xf32>
    %110 = arith.addf %109, %15 : vector<16x32xf32>
    %cst_42 = arith.constant -1.000000e+30 : f32
    %111 = vector.broadcast %cst_42 : f32 to vector<16x16xf32>
    %112 = arith.select %106, %111, %87 : vector<16x16xi1>, vector<16x16xf32>
    %113 = arith.maximumf %88, %110 : vector<16x32xf32>
    %114 = arith.minimumf %89, %110 : vector<16x32xf32>
    %cst_43 = arith.constant dense<0.000000e+00> : vector<32xf32>
    %115 = vector.multi_reduction <add>, %110, %cst_43 [0] : vector<16x32xf32> to vector<32xf32>
    %116 = vector.shape_cast %115 : vector<32xf32> to vector<1x32xf32>
    %117 = arith.addf %92, %116 : vector<1x32xf32>
    %118 = arith.mulf %110, %110 : vector<16x32xf32>
    %cst_44 = arith.constant dense<0.000000e+00> : vector<32xf32>
    %119 = vector.multi_reduction <add>, %118, %cst_44 [0] : vector<16x32xf32> to vector<32xf32>
    %120 = vector.shape_cast %119 : vector<32xf32> to vector<1x32xf32>
    %121 = arith.addf %96, %120 : vector<1x32xf32>
    %c4_i32 = arith.constant 4 : i32
    %cst_45 = arith.constant dense<0xFF800000> : vector<16xf32>
    %122 = vector.multi_reduction <maximumf>, %112, %cst_45 [1] : vector<16x16xf32> to vector<16xf32>
    %123 = vector.shape_cast %122 : vector<16xf32> to vector<16x1xf32>
    %124 = vector.broadcast %123 : vector<16x1xf32> to vector<16x16xf32>
    %125 = arith.cmpf oge, %112, %124 : vector<16x16xf32>
    %cst_46 = arith.constant 1.600000e+01 : f32
    %126 = vector.broadcast %cst_46 : f32 to vector<16x16xf32>
    %127 = arith.select %125, %17, %126 : vector<16x16xi1>, vector<16x16xf32>
    %cst_47 = arith.constant dense<0x7F800000> : vector<16xf32>
    %128 = vector.multi_reduction <minimumf>, %127, %cst_47 [1] : vector<16x16xf32> to vector<16xf32>
    %129 = vector.shape_cast %128 : vector<16xf32> to vector<16x1xf32>
    %130 = vector.broadcast %129 : vector<16x1xf32> to vector<16x16xf32>
    %131 = arith.cmpf oeq, %17, %130 : vector<16x16xf32>
    %132 = arith.extui %131 : vector<16x16xi1> to vector<16x16xi32>
    %133 = arith.sitofp %132 : vector<16x16xi32> to vector<16x16xf32>
    %cst_48 = arith.constant dense<0.000000e+00> : vector<16x32xf32>
    %134 = tpu.matmul %133, %14, %cst_48 {dimension_numbers = #tpu.dot_dimension_numbers<[1], [0], [0], [1], [0, 0, 1, 1], [], []>} : vector<16x16xf32>, vector<16x32xf32>, vector<16x32xf32> -> vector<16x32xf32>
    %135 = arith.addf %134, %15 : vector<16x32xf32>
    %cst_49 = arith.constant -1.000000e+30 : f32
    %136 = vector.broadcast %cst_49 : f32 to vector<16x16xf32>
    %137 = arith.select %131, %136, %112 : vector<16x16xi1>, vector<16x16xf32>
    %138 = arith.maximumf %113, %135 : vector<16x32xf32>
    %139 = arith.minimumf %114, %135 : vector<16x32xf32>
    %cst_50 = arith.constant dense<0.000000e+00> : vector<32xf32>
    %140 = vector.multi_reduction <add>, %135, %cst_50 [0] : vector<16x32xf32> to vector<32xf32>
    %141 = vector.shape_cast %140 : vector<32xf32> to vector<1x32xf32>
    %142 = arith.addf %117, %141 : vector<1x32xf32>
    %143 = arith.mulf %135, %135 : vector<16x32xf32>
    %cst_51 = arith.constant dense<0.000000e+00> : vector<32xf32>
    %144 = vector.multi_reduction <add>, %143, %cst_51 [0] : vector<16x32xf32> to vector<32xf32>
    %145 = vector.shape_cast %144 : vector<32xf32> to vector<1x32xf32>
    %146 = arith.addf %121, %145 : vector<1x32xf32>
    %c5_i32 = arith.constant 5 : i32
    %cst_52 = arith.constant dense<0xFF800000> : vector<16xf32>
    %147 = vector.multi_reduction <maximumf>, %137, %cst_52 [1] : vector<16x16xf32> to vector<16xf32>
    %148 = vector.shape_cast %147 : vector<16xf32> to vector<16x1xf32>
    %149 = vector.broadcast %148 : vector<16x1xf32> to vector<16x16xf32>
    %150 = arith.cmpf oge, %137, %149 : vector<16x16xf32>
    %cst_53 = arith.constant 1.600000e+01 : f32
    %151 = vector.broadcast %cst_53 : f32 to vector<16x16xf32>
    %152 = arith.select %150, %17, %151 : vector<16x16xi1>, vector<16x16xf32>
    %cst_54 = arith.constant dense<0x7F800000> : vector<16xf32>
    %153 = vector.multi_reduction <minimumf>, %152, %cst_54 [1] : vector<16x16xf32> to vector<16xf32>
    %154 = vector.shape_cast %153 : vector<16xf32> to vector<16x1xf32>
    %155 = vector.broadcast %154 : vector<16x1xf32> to vector<16x16xf32>
    %156 = arith.cmpf oeq, %17, %155 : vector<16x16xf32>
    %157 = arith.extui %156 : vector<16x16xi1> to vector<16x16xi32>
    %158 = arith.sitofp %157 : vector<16x16xi32> to vector<16x16xf32>
    %cst_55 = arith.constant dense<0.000000e+00> : vector<16x32xf32>
    %159 = tpu.matmul %158, %14, %cst_55 {dimension_numbers = #tpu.dot_dimension_numbers<[1], [0], [0], [1], [0, 0, 1, 1], [], []>} : vector<16x16xf32>, vector<16x32xf32>, vector<16x32xf32> -> vector<16x32xf32>
    %160 = arith.addf %159, %15 : vector<16x32xf32>
    %cst_56 = arith.constant -1.000000e+30 : f32
    %161 = vector.broadcast %cst_56 : f32 to vector<16x16xf32>
    %162 = arith.select %156, %161, %137 : vector<16x16xi1>, vector<16x16xf32>
    %163 = arith.maximumf %138, %160 : vector<16x32xf32>
    %164 = arith.minimumf %139, %160 : vector<16x32xf32>
    %cst_57 = arith.constant dense<0.000000e+00> : vector<32xf32>
    %165 = vector.multi_reduction <add>, %160, %cst_57 [0] : vector<16x32xf32> to vector<32xf32>
    %166 = vector.shape_cast %165 : vector<32xf32> to vector<1x32xf32>
    %167 = arith.addf %142, %166 : vector<1x32xf32>
    %168 = arith.mulf %160, %160 : vector<16x32xf32>
    %cst_58 = arith.constant dense<0.000000e+00> : vector<32xf32>
    %169 = vector.multi_reduction <add>, %168, %cst_58 [0] : vector<16x32xf32> to vector<32xf32>
    %170 = vector.shape_cast %169 : vector<32xf32> to vector<1x32xf32>
    %171 = arith.addf %146, %170 : vector<1x32xf32>
    %c6_i32 = arith.constant 6 : i32
    %cst_59 = arith.constant dense<0xFF800000> : vector<16xf32>
    %172 = vector.multi_reduction <maximumf>, %162, %cst_59 [1] : vector<16x16xf32> to vector<16xf32>
    %173 = vector.shape_cast %172 : vector<16xf32> to vector<16x1xf32>
    %174 = vector.broadcast %173 : vector<16x1xf32> to vector<16x16xf32>
    %175 = arith.cmpf oge, %162, %174 : vector<16x16xf32>
    %cst_60 = arith.constant 1.600000e+01 : f32
    %176 = vector.broadcast %cst_60 : f32 to vector<16x16xf32>
    %177 = arith.select %175, %17, %176 : vector<16x16xi1>, vector<16x16xf32>
    %cst_61 = arith.constant dense<0x7F800000> : vector<16xf32>
    %178 = vector.multi_reduction <minimumf>, %177, %cst_61 [1] : vector<16x16xf32> to vector<16xf32>
    %179 = vector.shape_cast %178 : vector<16xf32> to vector<16x1xf32>
    %180 = vector.broadcast %179 : vector<16x1xf32> to vector<16x16xf32>
    %181 = arith.cmpf oeq, %17, %180 : vector<16x16xf32>
    %182 = arith.extui %181 : vector<16x16xi1> to vector<16x16xi32>
    %183 = arith.sitofp %182 : vector<16x16xi32> to vector<16x16xf32>
    %cst_62 = arith.constant dense<0.000000e+00> : vector<16x32xf32>
    %184 = tpu.matmul %183, %14, %cst_62 {dimension_numbers = #tpu.dot_dimension_numbers<[1], [0], [0], [1], [0, 0, 1, 1], [], []>} : vector<16x16xf32>, vector<16x32xf32>, vector<16x32xf32> -> vector<16x32xf32>
    %185 = arith.addf %184, %15 : vector<16x32xf32>
    %cst_63 = arith.constant -1.000000e+30 : f32
    %186 = vector.broadcast %cst_63 : f32 to vector<16x16xf32>
    %187 = arith.select %181, %186, %162 : vector<16x16xi1>, vector<16x16xf32>
    %188 = arith.maximumf %163, %185 : vector<16x32xf32>
    %189 = arith.minimumf %164, %185 : vector<16x32xf32>
    %cst_64 = arith.constant dense<0.000000e+00> : vector<32xf32>
    %190 = vector.multi_reduction <add>, %185, %cst_64 [0] : vector<16x32xf32> to vector<32xf32>
    %191 = vector.shape_cast %190 : vector<32xf32> to vector<1x32xf32>
    %192 = arith.addf %167, %191 : vector<1x32xf32>
    %193 = arith.mulf %185, %185 : vector<16x32xf32>
    %cst_65 = arith.constant dense<0.000000e+00> : vector<32xf32>
    %194 = vector.multi_reduction <add>, %193, %cst_65 [0] : vector<16x32xf32> to vector<32xf32>
    %195 = vector.shape_cast %194 : vector<32xf32> to vector<1x32xf32>
    %196 = arith.addf %171, %195 : vector<1x32xf32>
    %c7_i32 = arith.constant 7 : i32
    %cst_66 = arith.constant dense<0xFF800000> : vector<16xf32>
    %197 = vector.multi_reduction <maximumf>, %187, %cst_66 [1] : vector<16x16xf32> to vector<16xf32>
    %198 = vector.shape_cast %197 : vector<16xf32> to vector<16x1xf32>
    %199 = vector.broadcast %198 : vector<16x1xf32> to vector<16x16xf32>
    %200 = arith.cmpf oge, %187, %199 : vector<16x16xf32>
    %cst_67 = arith.constant 1.600000e+01 : f32
    %201 = vector.broadcast %cst_67 : f32 to vector<16x16xf32>
    %202 = arith.select %200, %17, %201 : vector<16x16xi1>, vector<16x16xf32>
    %cst_68 = arith.constant dense<0x7F800000> : vector<16xf32>
    %203 = vector.multi_reduction <minimumf>, %202, %cst_68 [1] : vector<16x16xf32> to vector<16xf32>
    %204 = vector.shape_cast %203 : vector<16xf32> to vector<16x1xf32>
    %205 = vector.broadcast %204 : vector<16x1xf32> to vector<16x16xf32>
    %206 = arith.cmpf oeq, %17, %205 : vector<16x16xf32>
    %207 = arith.extui %206 : vector<16x16xi1> to vector<16x16xi32>
    %208 = arith.sitofp %207 : vector<16x16xi32> to vector<16x16xf32>
    %cst_69 = arith.constant dense<0.000000e+00> : vector<16x32xf32>
    %209 = tpu.matmul %208, %14, %cst_69 {dimension_numbers = #tpu.dot_dimension_numbers<[1], [0], [0], [1], [0, 0, 1, 1], [], []>} : vector<16x16xf32>, vector<16x32xf32>, vector<16x32xf32> -> vector<16x32xf32>
    %210 = arith.addf %209, %15 : vector<16x32xf32>
    %cst_70 = arith.constant -1.000000e+30 : f32
    %211 = vector.broadcast %cst_70 : f32 to vector<16x16xf32>
    %212 = arith.select %206, %211, %187 : vector<16x16xi1>, vector<16x16xf32>
    %213 = arith.maximumf %188, %210 : vector<16x32xf32>
    %214 = arith.minimumf %189, %210 : vector<16x32xf32>
    %cst_71 = arith.constant dense<0.000000e+00> : vector<32xf32>
    %215 = vector.multi_reduction <add>, %210, %cst_71 [0] : vector<16x32xf32> to vector<32xf32>
    %216 = vector.shape_cast %215 : vector<32xf32> to vector<1x32xf32>
    %217 = arith.addf %192, %216 : vector<1x32xf32>
    %218 = arith.mulf %210, %210 : vector<16x32xf32>
    %cst_72 = arith.constant dense<0.000000e+00> : vector<32xf32>
    %219 = vector.multi_reduction <add>, %218, %cst_72 [0] : vector<16x32xf32> to vector<32xf32>
    %220 = vector.shape_cast %219 : vector<32xf32> to vector<1x32xf32>
    %221 = arith.addf %196, %220 : vector<1x32xf32>
    %c0_73 = arith.constant 0 : index
    %c0_74 = arith.constant 0 : index
    %c0_75 = arith.constant 0 : index
    %222 = vector.load %arg6[%c0_73, %c0_74, %c0_75] : memref<1x16x32xf32, #tpu.memory_space<vmem>>, vector<1x16x32xf32>
    %223 = vector.shape_cast %222 : vector<1x16x32xf32> to vector<16x32xf32>
    %224 = vector.shape_cast %213 : vector<16x32xf32> to vector<1x16x32xf32>
    tpu.vector_store %arg6[%c0_73, %c0_74, %c0_75], %224 {strides = array<i32>} : memref<1x16x32xf32, #tpu.memory_space<vmem>>, vector<1x16x32xf32>,
    %c0_76 = arith.constant 0 : index
    %c0_77 = arith.constant 0 : index
    %c0_78 = arith.constant 0 : index
    %225 = vector.load %arg7[%c0_76, %c0_77, %c0_78] : memref<1x16x32xf32, #tpu.memory_space<vmem>>, vector<1x16x32xf32>
    %226 = vector.shape_cast %225 : vector<1x16x32xf32> to vector<16x32xf32>
    %227 = vector.shape_cast %214 : vector<16x32xf32> to vector<1x16x32xf32>
    tpu.vector_store %arg7[%c0_76, %c0_77, %c0_78], %227 {strides = array<i32>} : memref<1x16x32xf32, #tpu.memory_space<vmem>>, vector<1x16x32xf32>,
    %228 = tpu.iota {dimensions = array<i32: 0>} : vector<8x32xi32>
    %c0_i32_79 = arith.constant 0 : i32
    %229 = vector.broadcast %c0_i32_79 : i32 to vector<8x32xi32>
    %230 = arith.cmpi eq, %228, %229 : vector<8x32xi32>
    %cst_80 = arith.constant 0.000000e+00 : f32
    %231 = vector.shape_cast %217 : vector<1x32xf32> to vector<1x32xf32>
    %232 = vector.broadcast %231 : vector<1x32xf32> to vector<8x32xf32>
    %233 = vector.broadcast %cst_80 : f32 to vector<8x32xf32>
    %234 = arith.select %230, %232, %233 : vector<8x32xi1>, vector<8x32xf32>
    %c0_81 = arith.constant 0 : index
    %c0_82 = arith.constant 0 : index
    %c0_83 = arith.constant 0 : index
    %235 = vector.load %arg8[%c0_81, %c0_82, %c0_83] : memref<1x8x32xf32, #tpu.memory_space<vmem>>, vector<1x8x32xf32>
    %236 = vector.shape_cast %235 : vector<1x8x32xf32> to vector<8x32xf32>
    %237 = vector.shape_cast %234 : vector<8x32xf32> to vector<1x8x32xf32>
    tpu.vector_store %arg8[%c0_81, %c0_82, %c0_83], %237 {strides = array<i32>} : memref<1x8x32xf32, #tpu.memory_space<vmem>>, vector<1x8x32xf32>,
    %c0_i32_84 = arith.constant 0 : i32
    %238 = vector.broadcast %c0_i32_84 : i32 to vector<8x32xi32>
    %239 = arith.cmpi eq, %228, %238 : vector<8x32xi32>
    %cst_85 = arith.constant 0.000000e+00 : f32
    %240 = vector.shape_cast %221 : vector<1x32xf32> to vector<1x32xf32>
    %241 = vector.broadcast %240 : vector<1x32xf32> to vector<8x32xf32>
    %242 = vector.broadcast %cst_85 : f32 to vector<8x32xf32>
    %243 = arith.select %239, %241, %242 : vector<8x32xi1>, vector<8x32xf32>
    %c0_86 = arith.constant 0 : index
    %c0_87 = arith.constant 0 : index
    %c0_88 = arith.constant 0 : index
    %244 = vector.load %arg9[%c0_86, %c0_87, %c0_88] : memref<1x8x32xf32, #tpu.memory_space<vmem>>, vector<1x8x32xf32>
    %245 = vector.shape_cast %244 : vector<1x8x32xf32> to vector<8x32xf32>
    %246 = vector.shape_cast %243 : vector<8x32xf32> to vector<1x8x32xf32>
    tpu.vector_store %arg9[%c0_86, %c0_87, %c0_88], %246 {strides = array<i32>} : memref<1x8x32xf32, #tpu.memory_space<vmem>>, vector<1x8x32xf32>,
    return
  }
  func.func @transform_0(%arg0: i32, %arg1: i32) -> (i32, i32, i32) {
    %c0_i32 = arith.constant 0 : i32
    %c0_i32_0 = arith.constant 0 : i32
    return %arg0, %c0_i32, %arg1 : i32, i32, i32
  }
  func.func @transform_1(%arg0: i32, %arg1: i32) -> (i32, i32, i32) {
    %c0_i32 = arith.constant 0 : i32
    %c0_i32_0 = arith.constant 0 : i32
    %c0_i32_1 = arith.constant 0 : i32
    return %arg0, %c0_i32, %c0_i32_0 : i32, i32, i32
  }
  func.func @transform_2(%arg0: i32, %arg1: i32) -> (i32, i32) {
    %c0_i32 = arith.constant 0 : i32
    %c0_i32_0 = arith.constant 0 : i32
    %c0_i32_1 = arith.constant 0 : i32
    return %c0_i32, %c0_i32_0 : i32, i32
  }
  func.func @transform_3(%arg0: i32, %arg1: i32) -> (i32, i32) {
    %c0_i32 = arith.constant 0 : i32
    %c0_i32_0 = arith.constant 0 : i32
    %c0_i32_1 = arith.constant 0 : i32
    return %c0_i32, %c0_i32_0 : i32, i32
  }
  func.func @transform_4(%arg0: i32, %arg1: i32) -> (i32, i32, i32) {
    %c0_i32 = arith.constant 0 : i32
    %c0_i32_0 = arith.constant 0 : i32
    return %arg0, %arg1, %c0_i32 : i32, i32, i32
  }
  func.func @transform_5(%arg0: i32, %arg1: i32) -> (i32, i32, i32) {
    %c0_i32 = arith.constant 0 : i32
    %c0_i32_0 = arith.constant 0 : i32
    return %arg0, %arg1, %c0_i32 : i32, i32, i32
  }
  func.func @transform_6(%arg0: i32, %arg1: i32) -> (i32, i32, i32) {
    %c0_i32 = arith.constant 0 : i32
    %c0_i32_0 = arith.constant 0 : i32
    return %arg0, %arg1, %c0_i32 : i32, i32, i32
  }
  func.func @transform_7(%arg0: i32, %arg1: i32) -> (i32, i32, i32) {
    %c0_i32 = arith.constant 0 : i32
    %c0_i32_0 = arith.constant 0 : i32
    return %arg0, %arg1, %c0_i32 : i32, i32, i32
  }
}

</mosaic_0001>

<bundles_post_ra>
// kernel: tpu_custom_call.1
= control target key start
LH: loop header
LB: loop body
LE: loop exit
PB: predicated region body
PF: predicated region fallthrough
CT: control target
= control target key end

     0   :  { %s3342_s0 = inlined_call_operand.hbm [shape: f32[2,4,16], index: 0, kind: input, shape index: {}]   ;;  %s3343_s1 = inlined_call_operand.hbm [shape: f32[2,4,16], index: 1, kind: input, shape index: {}]   ;;  %s3344_s2 = inlined_call_operand.vmem [shape: f32[4,32], index: 2, kind: input, shape index: {}]   ;;  %s3345_s3 = inlined_call_operand.vmem [shape: f32[4,32], index: 3, kind: input, shape index: {}]   ;;  %s3346_s4 = inlined_call_operand.hbm [shape: f32[2,16,32], index: 4, kind: output, shape index: {0}]   ;;  %s3347_s5 = inlined_call_operand.hbm [shape: f32[2,16,32], index: 5, kind: output, shape index: {1}]   ;;  %s3348_s6 = inlined_call_operand.hbm [shape: f32[2,8,32], index: 6, kind: output, shape index: {2}]   ;;  %s3349_s7 = inlined_call_operand.hbm [shape: f32[2,8,32], index: 7, kind: output, shape index: {3}]  }
   0x1   :  { %3357 = sst [smem:[#allocation20_spill]] %s3342_s0 }
   0x2   :  { %13 = vsyncpa [#allocation3], 0 }
   0x3   :  { %15 = vsyncpa [#allocation3 + $0x1], 0 }
   0x4   :  { %16 = vsyncpa [#allocation6], 0 }
   0x5   :  { %18 = vsyncpa [#allocation6 + $0x1], 0 }
   0x6   :  { %19 = vsyncpa [#allocation4], 0 }
   0x7   :  { %21 = vsyncpa [#allocation4 + $0x1], 0 }
   0x8   :  { %22 = vsyncpa [#allocation9], 0 }
   0x9   :  { %24 = vsyncpa [#allocation9 + $0x1], 0 }
   0xa   :  { %25 = vsyncpa [#allocation12], 0 }
   0xb   :  { %27 = vsyncpa [#allocation12 + $0x1], 0  ;;  %s2646_s24 = smov 0   ;;  %s2648_s25 = smov 0  }
   0xc   :  { %s2650_s26 = smov 0   ;;  %s2652_s27 = smov 0  }
   0xd   :  { %s2654_s28 = smov 0   ;;  %s2656_s29 = smov 0  }
   0xe LB: > { %3358 = sst [smem:[#allocation18_spill]] %s2591_s28  ;;  %s2677_s30 = sadd.s32 4294967295, %s2595_s29   ;;  %s2595_s29 = sphi %s2656_s29, %s33_s29   ;;  %s2591_s28 = sphi %s2654_s28, %s3378_s28   ;;  %s2587_s27 = sphi %s2652_s27, %s3377_s27   ;;  %s2583_s26 = sphi %s2650_s26, %s3381_s26   ;;  %s2579_s25 = sphi %s2648_s25, %s3380_s25   ;;  %s2575_s24 = sphi %s2646_s24, %s3379_s24  }
   0xf   : > { %s3350_s8 = sadd.s32 4294967294, %s2595_s29   ;;  %s45_s9 = sadd.s32 1, %s2591_s28 }
  0x10   : > { %s54_s10 = sadd.s32 1, %s2583_s26  ;;  %p47_p0 = scmp.ge.s32.totalorder %s45_s9, 2 }
  0x11   : > { %p61_p1 = scmp.ne.s32.totalorder %s2583_s26, %s2579_s25  ;;  %p62_p2 = scmp.eq.s32.totalorder %s2595_s29, 0 }
  0x12   : > { %p67_p3 = scmp.ne.s32.totalorder %s2579_s25, %s2575_s24  ;;  %s3383_s9 = smov (%p47_p0, %s45_s9), 0 }
  0x13   : > { %3359 = sst [smem:[#allocation19_spill]] %s3383_s9  ;;  %p2689_p4 = por %p62_p2, %p61_p1 }
  0x14   : > { %p68_p5 = scmp.eq.s32.totalorder %s2677_s30, 0  ;;  %s49_s12 = ssub.s32 %s2591_s28, %s3383_s9 }
  0x15   : > { %p161_p6 = scmp.eq.s32.totalorder %s2677_s30, 1  ;;  %p52_p7 = scmp.eq.s32.totalorder %s49_s12, 0 }
  0x16   : > { %p2697_p8 = por %p68_p5, %p67_p3  ;;  %p167_p10 = scmp.eq.s32.totalorder %s3350_s8, 1 }
  0x17   : > { %p2701_p9 = por %p161_p6, %p61_p1  ;;  %p2304_p13 = scmp.lt.s32.totalorder %s2595_s29, 2 }
  0x18   : > { %s3361_s13 = scalar_select %p2697_p8, 1, 0 }
  0x19   : > { %s3362_s14 = scalar_select %p2701_p9, 1, 0 }
  0x1a   : > { %s2708_s15 = scalar_select %p52_p7, %s2583_s26, %s54_s10  }
  0x1b   : > { %p2710_p11 = por %p167_p10, %p67_p3  ;;  %s2717_s17 = sand.u32 1, %s2583_s26  }
  0x1c   : > { %s3351_s18 = sshll.u32 %s2717_s17, 2  ;;  %s3352_s19 = sshll.u32 %s2591_s28, 6 }
  0x1d   : > { %s3363_s16 = scalar_select %p2710_p11, 1, 0 }
  0x1e   : > { %s3364_s0 = sld [smem:[#allocation20_spill]]  ;;  %s281_s23 = scalar_lea.vmem [#allocation2], %s3351_s18 }
  0x1f   : > { %s289_s10 = sshll.u32 %s281_s23, 4  ;;  %p2734_p0 = pnand %p2304_p13, %p2689_p4  ;;  %s2730_s10 = int_to_ptr.vmem [resolvable:$true] %s289_s10 }
  0x20   : > { %s278_s20 = scalar_lea.sflag [#allocation3], %s2717_s17 }
  0x21   : > { %p2359_p5 = pneg %p2734_p0 }
  0x24   : > { %s2726_s22 = scalar_lea.hbm %s3364_s0, %s3352_s19  ;;  %s2362_s11 = scalar_lea.hbm %s3364_s0, 128 }
  0x25   : > { %s2357_s21 = scalar_lea.hbm %s2726_s22, 64  ;;  %p2363_p4 = scmp.lt.u32.totalorder %s2726_s22, %s3364_s0 }
  0x26   : > { %p2358_p3 = scmp.ne.s32.totalorder %s2726_s22, %s2357_s21  ;;  %p2364_p10 = scmp.lt.u32.totalorder %s2362_s11, %s2357_s21 }
  0x27   : > { %p2366_p12 = scmp.lt.u32.totalorder %s2357_s21, %s2726_s22 }
  0x28   : > { %p2360_p6 = pnand %p2359_p5, %p2358_p3  ;;  %p2365_p13 = por %p2364_p10, %p2363_p4 }
  0x2a   : > { %p2361_p7 = pneg %p2360_p6  ;;  %p2367_p1 = por %p2366_p12, %p2365_p13 }
  0x2c   : > { %p2368_p2 = pnand %p2367_p1, %p2361_p7 }
  0x2e   : > { %2371 = shalt.err (!%p2368_p2)
}
  0x2f   : > { %s2372_s9 = scalar_lea.vmem %s2730_s10, 64  ;;  %s2597_s8 = smov [#allocation2]  }
  0x30   : > { %p2373_p3 = scmp.ne.s32.totalorder %s2730_s10, %s2372_s9  ;;  %s2377_s23 = sshll.u32 %s2597_s8, 4  ;;  %s2378_s23 = int_to_ptr.vmem [resolvable:$false] %s2377_s23 }
  0x31   : > { %s2379_s18 = scalar_lea.vmem %s2378_s23, 128  ;;  %p2380_p9 = scmp.lt.s32.totalorder %s2730_s10, %s2378_s23 }
  0x32   : > { %p2375_p6 = pnand %p2373_p3, %p2359_p5  ;;  %p2381_p4 = scmp.lt.s32.totalorder %s2379_s18, %s2372_s9 }
  0x34   : > { %p2376_p11 = pneg %p2375_p6  ;;  %p2382_p10 = por %p2381_p4, %p2380_p9 }
  0x36   : > { %p2383_p12 = pnand %p2382_p10, %p2376_p11 }
  0x38   : > { %2386 = shalt.err (!%p2383_p12)
}
  0x39   : > { %2287 = dma.hbm_to_vmem [thread:$0]  (!%p2734_p0), %s2726_s22, 64, %s2730_s10, %s278_s20  }
  0x3a   : > { %p3366_p1 = scmp.lt.s32.totalorder %s2595_s29, 3  ;;  %p3367_p2 = scmp.ge.s32.totalorder %s2595_s29, 1 }
  0x3b   : > { %s3369_s9 = sshll.u32 %s2591_s28, 6  ;;  %s3370_s23 = sshll.u32 %s2717_s17, 2 }
  0x3c   : > { %p2770_p7 = pnand %p3367_p2, %p3366_p1  ;;  %s2779_s8 = scalar_lea.hbm %s3343_s1, %s3369_s9 }
  0x3d   : > { %s300_s18 = scalar_lea.vmem [#allocation5], %s3370_s23  ;;  %s297_s22 = scalar_lea.sflag [#allocation6], %s2717_s17 }
  0x3e   : > { %s3368_s19 = scalar_select %p2770_p7, 1, 0 }
  0x3f   : > { %s307_s0 = sshll.u32 %s300_s18, 4  ;;  %s2387_s10 = scalar_lea.hbm %s2779_s8, 64  ;;  %s308_s0 = int_to_ptr.vmem [resolvable:$true] %s307_s0 }
  0x40   : > { %p2388_p9 = scmp.ne.s32.totalorder %s2779_s8, %s2387_s10  ;;  %s2392_s9 = scalar_lea.hbm %s3343_s1, 128 }
  0x41   : > { %p2393_p3 = scmp.lt.u32.totalorder %s2779_s8, %s3343_s1  ;;  %p2394_p6 = scmp.lt.u32.totalorder %s2392_s9, %s2387_s10 }
  0x42   : > { %p2390_p11 = pnand %p2388_p9, %p2359_p5  ;;  %p2396_p10 = scmp.lt.u32.totalorder %s2387_s10, %s2779_s8 }
  0x43   : > { %p2395_p4 = por %p2394_p6, %p2393_p3 }
  0x44   : > { %p2391_p13 = pneg %p2390_p11 }
  0x45   : > { %p2397_p12 = por %p2396_p10, %p2395_p4 }
  0x47   : > { %p2398_p1 = pnand %p2397_p12, %p2391_p13 }
  0x49   : > { %2401 = shalt.err (!%p2398_p1)
}
  0x4a   : > { %s2402_s17 = scalar_lea.vmem %s308_s0, 64  ;;  %s2598_s23 = smov [#allocation5]  }
  0x4b   : > { %p2403_p2 = scmp.ne.s32.totalorder %s308_s0, %s2402_s17  ;;  %s2407_s28 = sshll.u32 %s2598_s23, 4  ;;  %s2408_s28 = int_to_ptr.vmem [resolvable:$false] %s2407_s28 }
  0x4c   : > { %s2409_s18 = scalar_lea.vmem %s2408_s28, 128  ;;  %p2410_p8 = scmp.lt.s32.totalorder %s308_s0, %s2408_s28 }
  0x4d   : > { %p2405_p9 = pnand %p2403_p2, %p2359_p5  ;;  %p2411_p7 = scmp.lt.s32.totalorder %s2409_s18, %s2402_s17 }
  0x4f   : > { %p2406_p11 = pneg %p2405_p9  ;;  %p2412_p3 = por %p2411_p7, %p2410_p8 }
  0x51   : > { %p2413_p6 = pnand %p2412_p3, %p2406_p11 }
  0x53   : > { %2416 = shalt.err (!%p2413_p6)
}
  0x54   : > { %2290 = dma.hbm_to_vmem [thread:$0]  (!%p2734_p0), %s2779_s8, 64, %s308_s0, %s297_s22  }
  0x55   : > { %p3371_p13 = scmp.ne.s32.totalorder %s3368_s19, 0 }
  0x56   : > { %s2806_s10 = sand.u32 (!%p3371_p13), 1, %s2579_s25   ;;  %p3372_p5 = scmp.ne.s32.totalorder (!%p3371_p13), %s3361_s13, 0 }
  0x57   : > { %316 = sbr.rel (%p3371_p13) target bundleno = 3077 (0xc05), region = 36  ;;  %s2067_s20 = sshll.u32 (!%p3371_p13), %s2806_s10, 2 }
  0x58   : > { %s319_s9 = scalar_lea.sflag (!%p3371_p13), [#allocation3], %s2806_s10  ;;  %s322_s21 = scalar_lea.vmem (!%p3371_p13), [#allocation2], %s2067_s20 }
  0x5e   : > { %2554 = dma.done.wait (%p3372_p5), %s319_s9, 64  }
  0x5f   : > { %2556 = vsyncadd (%p3372_p5), %s319_s9, 4294967232  ;;  %s328_s0 = scalar_lea.sflag [#allocation6], %s2806_s10  ;;  %s331_s12 = scalar_lea.vmem [#allocation5], %s2067_s20 }
  0x60   : > { %2558 = dma.done.wait (%p3372_p5), %s328_s0, 64  }
  0x61   : > { %2560 = vsyncadd (%p3372_p5), %s328_s0, 4294967232  ;;  %v384_v0 = vld [vmem:[%s322_s21] sm:$0xf]  ;;  %v2819_v1 = vld [vmem:[%s331_s12] sm:$0xf]  ;;  %vm427_vm0 = vcmask 1043456   ;;  %v713_v23 = vlaneseq }
  0x62   : > { %388 = vxpose.xlu0.b32.start.end [1/1] (short) (narrow) %v384_v0, 16  ;;  %2169 = vmatprep.subr.msk.mxu0 %vm427_vm0, %v2819_v1  ;;  %v387_v2 = vld [vmem:[%s3345_s3] sm:$0xf]  ;;  %vm420_vm1 = vcmask 31744   ;;  %v506_v5 = vmul.f32 %v2819_v1, %v2819_v1  ;;  %vm507_vm2 = vcmask 125952   ;;  %vm716_vm3 = vcmask 130048  }
  0x63   : > { %2170 = vmatpush3.msk.msra.mxu0 %vm427_vm0, %v2819_v1  ;;  %v714_v24 = vand.u32 127, %v713_v23  ;;  %v2599_v45 = vmov 0.0   ;;  %s2069_s11 = sshll.u32 %s2806_s10, 4  ;;  %s1780_s17 = sand.u32 1, %s2677_s30  }
  0x64   : > { %2179 = vmatprep.subr.msk.mxu0 %vm427_vm0, %v387_v2  ;;  %v508_v6 = vsel %vm507_vm2, %v506_v5, 0.0  ;;  %s2126_s23 = sshll.u32 %s2587_s27, 8  ;;  %s367_s28 = scalar_lea.vmem [#allocation8], %s2069_s11 }
  0x65   : > { %v509_v7 = vrot.slane %v508_v6, 4  ;;  %v2843_v25 = vcvt.s32.f32 %v714_v24  ;;  %s1824_s18 = sshll.u32 %s367_s28, 4  ;;  %s360_s20 = scalar_lea.vmem [#allocation7], %s2069_s11  ;;  %s3171_s18 = int_to_ptr.vmem [resolvable:$true] %s1824_s18 }
  0x66   : > { %s1806_s9 = sshll.u32 %s360_s20, 4  ;;  %s3168_s12 = scalar_lea.hbm %s3347_s5, %s2126_s23  ;;  %s3183_s9 = int_to_ptr.vmem [resolvable:$true] %s1806_s9 }
  0x67   : > { %v510_v8 = vadd.f32 %v509_v7, %v508_v6  ;;  %s3181_s13 = scalar_lea.hbm %s3346_s4, %s2126_s23  ;;  %s3191_s22 = scalar_lea.sflag [#allocation9], %s1780_s17 }
  0x68   : > { %s2417_s11 = scalar_lea.vmem %s3171_s18, 256  ;;  %p3373_p0 = scmp.ne.s32.totalorder %s3362_s14, 0 }
  0x69   : > { %v511_v9 = vrot.slane %v510_v8, 2  ;;  %p2418_p8 = scmp.ne.s32.totalorder %s3171_s18, %s2417_s11  ;;  %s2600_s23 = smov [#allocation8]  }
  0x6a   : > { %s2421_s21 = sshll.u32 %s2600_s23, 4  ;;  %s2422_s21 = int_to_ptr.vmem [resolvable:$false] %s2421_s21 }
  0x6b   : > { %v512_v10 = vadd.f32 %v511_v9, %v510_v8  ;;  %p2419_p7 = pnand %p2418_p8, %p3373_p0  ;;  %s2423_s0 = scalar_lea.vmem %s2422_s21, 512 }
  0x6c   : > { %p2424_p10 = scmp.lt.s32.totalorder %s3171_s18, %s2422_s21  ;;  %p2425_p12 = scmp.lt.s32.totalorder %s2423_s0, %s2417_s11 }
  0x6d   : > { %v513_v11 = vrot.slane %v512_v10, 1  ;;  %p2420_p4 = pneg %p2419_p7 }
  0x6e   : > { %p2426_p1 = por %p2425_p12, %p2424_p10 }
  0x6f   : > { %v514_v12 = vadd.f32 %v513_v11, %v512_v10 }
  0x70   : > { %p2427_p2 = pnand %p2426_p1, %p2420_p4 }
  0xe2   : > { %v404_v3 = vpop.trf.xlu0 }
  0xe3   : > { %2171 = vmatprep.mubr.msk.f32.mxu0 %vm420_vm1, %v404_v3 }
  0xe6   : > { %v405_v4 = vpop.trf.xlu0 }
  0xe7   : > { %2172 = vmatmul.mubr.msk.f32.vlgmr.msra.gmra.mrb[0].mxu0 %vm420_vm1, %v405_v4 }
  0xe8   : > { %2181 = vmatprep.mubr.msk.f32.mxu0 %vm420_vm1, %v404_v3  ;;  %2180 = vmatpush3.msk.msra.mxu0 %vm427_vm0, %v387_v2 }
  0xeb   : > { %2182 = vmatmul.mubr.msk.f32.vlgmr.msra.gmra.mrb[2].mxu0 %vm420_vm1, %v405_v4 }
 0x1ba   : > { %v2173_v13 = vpop.f32.mrb[0].mxu0 }
 0x1bb   : > { %v516_v14 = vmul.f32 2.0, %v2173_v13  ;;  %v497_v15 = vpop.f32.mrb[1].mxu0 }
 0x1bc   : > { %v515_v16 = vmul.f32 2.0, %v497_v15 }
 0x1bd   : > { %v518_v17 = vsub.f32 %v516_v14, %v514_v12 }
 0x1be   : > { %v517_v18 = vsub.f32 %v515_v16, %v514_v12  ;;  %v2836_v19 = vpop.f32.mrb[2].mxu0 }
 0x1bf   : > { %v2838_v20 = vpop.f32.mrb[3].mxu0  ;;  %v720_v21 = vsel %vm716_vm3, %v518_v17, -inf }
 0x1c0   : > { %721 = vmax.xlane.f32.xlu1 %v720_v21  ;;  %v717_v22 = vsel %vm716_vm3, %v517_v18, -inf }
 0x1c1   : > { %718 = vmax.xlane.f32.xlu0 %v717_v22 }
 0x24d   : > { %v722_v26 = vpop.xlane.xlu1 %721 }
 0x24e   : > { %v719_v27 = vpop.xlane.xlu0 %718  ;;  %vm724_vm4 = vcmp.ge.f32.partialorder %v518_v17, %v722_v26 }
 0x24f   : > { %vm723_vm5 = vcmp.ge.f32.partialorder %v517_v18, %v719_v27  ;;  %v726_v30 = vsel %vm724_vm4, %v2843_v25, 16.0 }
 0x250   : > { %v725_v28 = vsel %vm723_vm5, %v2843_v25, 16.0  ;;  %v730_v31 = vsel %vm716_vm3, %v726_v30, inf }
 0x251   : > { %v727_v29 = vsel %vm716_vm3, %v725_v28, inf }
 0x252   : > { %728 = vmin.xlane.f32.xlu1 %v727_v29 }
 0x256   : > { %731 = vmin.xlane.f32.xlu1 %v730_v31 }
 0x2df   : > { %v2849_v32 = vpop.xlane.xlu1 %728 }
 0x2e0   : > { %vm733_vm6 = vcmp.eq.f32.partialorder %v2843_v25, %v2849_v32 }
 0x2e1   : > { %v820_v33 = vsel %vm733_vm6, -1e+30, %v517_v18 }
 0x2e2   : > { %v849_v34 = vsel %vm716_vm3, %v820_v33, -inf }
 0x2e3   : > { %850 = vmax.xlane.f32.xlu1 %v849_v34  ;;  %v2857_v35 = vpop.xlane.xlu1 %731 }
 0x2e4   : > { %vm734_vm7 = vcmp.eq.f32.partialorder %v2843_v25, %v2857_v35 }
 0x2e5   : > { %v821_v36 = vsel %vm734_vm7, -1e+30, %v518_v17 }
 0x2e6   : > { %v852_v37 = vsel %vm716_vm3, %v821_v36, -inf }
 0x2e7   : > { %853 = vmax.xlane.f32.xlu1 %v852_v37 }
 0x370   : > { %v851_v38 = vpop.xlane.xlu1 %850 }
 0x371   : > { %vm855_vm8 = vcmp.ge.f32.partialorder %v820_v33, %v851_v38 }
 0x372   : > { %v857_v39 = vsel %vm855_vm8, %v2843_v25, 16.0 }
 0x373   : > { %v859_v40 = vsel %vm716_vm3, %v857_v39, inf }
 0x374   : > { %860 = vmin.xlane.f32.xlu1 %v859_v40  ;;  %v854_v41 = vpop.xlane.xlu1 %853 }
 0x375   : > { %vm856_vm9 = vcmp.ge.f32.partialorder %v821_v36, %v854_v41 }
 0x376   : > { %v858_v42 = vsel %vm856_vm9, %v2843_v25, 16.0 }
 0x377   : > { %v862_v43 = vsel %vm716_vm3, %v858_v42, inf }
 0x378   : > { %863 = vmin.xlane.f32.xlu1 %v862_v43  ;;  %v386_v43 = vld [vmem:[%s3344_s2] sm:$0xf] }
 0x379   : > { %2174 = vmatprep.subr.msk.mxu1 %vm427_vm0, %v386_v43 }
 0x37a   : > { %2175 = vmatpush3.msk.msra.mxu1 %vm427_vm0, %v386_v43 }
 0x401   : > { %v861_v44 = vpop.xlane.xlu1 %860 }
 0x402   : > { %vm865_vm10 = vcmp.eq.f32.partialorder %v2843_v25, %v861_v44 }
 0x403   : > { %v2086_v46 = vsel %vm865_vm10, 1.0, %v2599_v45  ;;  %v952_v47 = vsel %vm865_vm10, -1e+30, %v820_v33 }
 0x404   : > { %2195 = vmatprep.mubr.msk.f32.mxu0 %vm716_vm3, %v2086_v46  ;;  %v980_v48 = vsel %vm716_vm3, %v952_v47, -inf }
 0x405   : > { %981 = vmax.xlane.f32.xlu1 %v980_v48  ;;  %v2873_v49 = vpop.xlane.xlu1 %863 }
 0x406   : > { %vm866_vm11 = vcmp.eq.f32.partialorder %v2843_v25, %v2873_v49 }
 0x407   : > { %v953_v50 = vsel %vm866_vm11, -1e+30, %v821_v36 }
 0x408   : > { %v983_v51 = vsel %vm716_vm3, %v953_v50, -inf }
 0x409   : > { %984 = vmax.xlane.f32.xlu1 %v983_v51 }
 0x492   : > { %v982_v52 = vpop.xlane.xlu1 %981 }
 0x493   : > { %vm986_vm12 = vcmp.ge.f32.partialorder %v952_v47, %v982_v52 }
 0x494   : > { %v988_v53 = vsel %vm986_vm12, %v2843_v25, 16.0 }
 0x495   : > { %v990_v54 = vsel %vm716_vm3, %v988_v53, inf  ;;  %v2082_v53 = vsel %vm733_vm6, 1.0, %v2599_v45 }
 0x496   : > { %991 = vmin.xlane.f32.xlu1 %v990_v54  ;;  %v985_v55 = vpop.xlane.xlu1 %984 }
 0x497   : > { %vm987_vm13 = vcmp.ge.f32.partialorder %v953_v50, %v985_v55 }
 0x498   : > { %v989_v56 = vsel %vm987_vm13, %v2843_v25, 16.0 }
 0x499   : > { %v993_v57 = vsel %vm716_vm3, %v989_v56, inf }
 0x49a   : > { %994 = vmin.xlane.f32.xlu1 %v993_v57 }
 0x523   : > { %v2885_v58 = vpop.xlane.xlu1 %991 }
 0x524   : > { %vm996_vm14 = vcmp.eq.f32.partialorder %v2843_v25, %v2885_v58 }
 0x525   : > { %v1083_v59 = vsel %vm996_vm14, -1e+30, %v952_v47 }
 0x526   : > { %v1111_v60 = vsel %vm716_vm3, %v1083_v59, -inf }
 0x527   : > { %1112 = vmax.xlane.f32.xlu1 %v1111_v60  ;;  %v2893_v61 = vpop.xlane.xlu1 %994 }
 0x528   : > { %vm997_vm15 = vcmp.eq.f32.partialorder %v2843_v25, %v2893_v61 }
 0x529   : > { %v1084_v62 = vsel %vm997_vm15, -1e+30, %v953_v50  ;;  %v2091_v49 = vsel %vm997_vm15, 1.0, %v2599_v45 }
 0x52a   : > { %v1114_v63 = vsel %vm716_vm3, %v1084_v62, -inf }
 0x52b   : > { %1115 = vmax.xlane.f32.xlu1 %v1114_v63 }
 0x5b4   : > { %v1113_v0 = vpop.xlane.xlu1 %1112 }
 0x5b5   : > { %vm1117_vm2 = vcmp.ge.f32.partialorder %v1083_v59, %v1113_v0  ;;  %v2083_v0 = vsel %vm734_vm7, 1.0, %v2599_v45 }
 0x5b6   : > { %v1119_v2 = vsel %vm1117_vm2, %v2843_v25, 16.0 }
 0x5b7   : > { %v1121_v3 = vsel %vm716_vm3, %v1119_v2, inf  ;;  %v2087_v2 = vsel %vm866_vm11, 1.0, %v2599_v45 }
 0x5b8   : > { %1122 = vmin.xlane.f32.xlu1 %v1121_v3  ;;  %v1116_v4 = vpop.xlane.xlu1 %1115  ;;  %v2090_v3 = vsel %vm996_vm14, 1.0, %v2599_v45  ;;  %vm826_vm14 = vcmask 261120  }
 0x5b9   : > { %vm1118_vm4 = vcmp.ge.f32.partialorder %v1084_v62, %v1116_v4 }
 0x5ba   : > { %v1120_v5 = vsel %vm1118_vm4, %v2843_v25, 16.0 }
 0x5bb   : > { %v1124_v6 = vsel %vm716_vm3, %v1120_v5, inf }
 0x5bc   : > { %1125 = vmin.xlane.f32.xlu0 %v1124_v6 }
 0x645   : > { %v2905_v7 = vpop.xlane.xlu1 %1122 }
 0x646   : > { %vm1127_vm5 = vcmp.eq.f32.partialorder %v2843_v25, %v2905_v7 }
 0x647   : > { %v1214_v8 = vsel %vm1127_vm5, -1e+30, %v1083_v59  ;;  %v2094_v35 = vsel %vm1127_vm5, 1.0, %v2599_v45 }
 0x648   : > { %v1242_v9 = vsel %vm716_vm3, %v1214_v8, -inf }
 0x649   : > { %v2913_v10 = vpop.xlane.xlu0 %1125  ;;  %1243 = vmax.xlane.f32.xlu1 %v1242_v9 }
 0x64a   : > { %vm1128_vm8 = vcmp.eq.f32.partialorder %v2843_v25, %v2913_v10 }
 0x64b   : > { %v1215_v11 = vsel %vm1128_vm8, -1e+30, %v1084_v62  ;;  %v2095_v58 = vsel %vm1128_vm8, 1.0, %v2599_v45 }
 0x64c   : > { %v1245_v12 = vsel %vm716_vm3, %v1215_v11, -inf }
 0x64d   : > { %1246 = vmax.xlane.f32.xlu0 %v1245_v12 }
 0x6d6   : > { %v1244_v13 = vpop.xlane.xlu1 %1243 }
 0x6d7   : > { %vm1248_vm9 = vcmp.ge.f32.partialorder %v1214_v8, %v1244_v13 }
 0x6d8   : > { %v1250_v14 = vsel %vm1248_vm9, %v2843_v25, 16.0 }
 0x6d9   : > { %v1252_v15 = vsel %vm716_vm3, %v1250_v14, inf }
 0x6da   : > { %v1247_v16 = vpop.xlane.xlu0 %1246  ;;  %1253 = vmin.xlane.f32.xlu1 %v1252_v15 }
 0x6db   : > { %vm1249_vm10 = vcmp.ge.f32.partialorder %v1215_v11, %v1247_v16 }
 0x6dc   : > { %v1251_v17 = vsel %vm1249_vm10, %v2843_v25, 16.0 }
 0x6dd   : > { %v1255_v18 = vsel %vm716_vm3, %v1251_v17, inf }
 0x6de   : > { %1256 = vmin.xlane.f32.xlu0 %v1255_v18 }
 0x767   : > { %v2925_v21 = vpop.xlane.xlu1 %1253 }
 0x768   : > { %vm1258_vm12 = vcmp.eq.f32.partialorder %v2843_v25, %v2925_v21 }
 0x769   : > { %v1345_v22 = vsel %vm1258_vm12, -1e+30, %v1214_v8  ;;  %v2098_v4 = vsel %vm1258_vm12, 1.0, %v2599_v45 }
 0x76a   : > { %v1373_v24 = vsel %vm716_vm3, %v1345_v22, -inf }
 0x76b   : > { %v2933_v26 = vpop.xlane.xlu0 %1256  ;;  %1374 = vmax.xlane.f32.xlu1 %v1373_v24 }
 0x76c   : > { %vm1259_vm13 = vcmp.eq.f32.partialorder %v2843_v25, %v2933_v26 }
 0x76d   : > { %v1346_v27 = vsel %vm1259_vm13, -1e+30, %v1215_v11  ;;  %v2099_v5 = vsel %vm1259_vm13, 1.0, %v2599_v45 }
 0x76e   : > { %v1376_v28 = vsel %vm716_vm3, %v1346_v27, -inf }
 0x76f   : > { %1377 = vmax.xlane.f32.xlu0 %v1376_v28 }
 0x7f8   : > { %v1375_v29 = vpop.xlane.xlu1 %1374 }
 0x7f9   : > { %vm1379_vm2 = vcmp.ge.f32.partialorder %v1345_v22, %v1375_v29 }
 0x7fa   : > { %v1381_v30 = vsel %vm1379_vm2, %v2843_v25, 16.0 }
 0x7fb   : > { %v1383_v31 = vsel %vm716_vm3, %v1381_v30, inf }
 0x7fc   : > { %v1378_v33 = vpop.xlane.xlu0 %1377  ;;  %1384 = vmin.xlane.f32.xlu1 %v1383_v31 }
 0x7fd   : > { %vm1380_vm4 = vcmp.ge.f32.partialorder %v1346_v27, %v1378_v33 }
 0x7fe   : > { %v1382_v34 = vsel %vm1380_vm4, %v2843_v25, 16.0 }
 0x7ff   : > { %v1386_v36 = vsel %vm716_vm3, %v1382_v34, inf }
 0x800   : > { %1387 = vmin.xlane.f32.xlu0 %v1386_v36 }
 0x889   : > { %v2945_v37 = vpop.xlane.xlu1 %1384 }
 0x88a   : > { %vm1389_vm9 = vcmp.eq.f32.partialorder %v2843_v25, %v2945_v37 }
 0x88b   : > { %v1476_v38 = vsel %vm1389_vm9, -1e+30, %v1345_v22  ;;  %v2102_v61 = vsel %vm1389_vm9, 1.0, %v2599_v45 }
 0x88c   : > { %v1504_v39 = vsel %vm716_vm3, %v1476_v38, -inf }
 0x88d   : > { %v2953_v40 = vpop.xlane.xlu0 %1387  ;;  %1505 = vmax.xlane.f32.xlu1 %v1504_v39 }
 0x88e   : > { %vm1390_vm10 = vcmp.eq.f32.partialorder %v2843_v25, %v2953_v40 }
 0x88f   : > { %v1477_v41 = vsel %vm1390_vm10, -1e+30, %v1346_v27  ;;  %v2103_v6 = vsel %vm1390_vm10, 1.0, %v2599_v45 }
 0x890   : > { %v1507_v42 = vsel %vm716_vm3, %v1477_v41, -inf }
 0x891   : > { %1508 = vmax.xlane.f32.xlu0 %v1507_v42 }
 0x8c0   : > { %519 = vxpose.xlu1.b32.start.end [1/1] (short) (narrow) %v2819_v1, 16 }
 0x91a   : > { %v1506_v44 = vpop.xlane.xlu1 %1505 }
 0x91b   : > { %vm1510_vm2 = vcmp.ge.f32.partialorder %v1476_v38, %v1506_v44 }
 0x91c   : > { %v1512_v46 = vsel %vm1510_vm2, %v2843_v25, 16.0 }
 0x91d   : > { %v1514_v47 = vsel %vm716_vm3, %v1512_v46, inf }
 0x91e   : > { %v1509_v48 = vpop.xlane.xlu0 %1508  ;;  %1515 = vmin.xlane.f32.xlu0 %v1514_v47 }
 0x91f   : > { %vm1511_vm4 = vcmp.ge.f32.partialorder %v1477_v41, %v1509_v48 }
 0x920   : > { %v1513_v50 = vsel %vm1511_vm4, %v2843_v25, 16.0 }
 0x921   : > { %v1517_v1 = vsel %vm716_vm3, %v1513_v50, inf }
 0x922   : > { %1518 = vmin.xlane.f32.xlu0 %v1517_v1 }
 0x940   : > { %v535_v51 = vpop.trf.xlu1 }
 0x941   : > { %2176 = vmatprep.mubr.msk.f32.mxu1 %vm420_vm1, %v535_v51 }
 0x944   : > { %v536_v52 = vpop.trf.xlu1 }
 0x945   : > { %2177 = vmatmul.mubr.msk.f32.vlgmr.msra.gmra.mrb[0].mxu1 %vm420_vm1, %v536_v52 }
 0x946   : > { %2188 = vmatprep.mubr.msk.f32.mxu1 %vm716_vm3, %v2082_v53 }
 0x9ab   : > { %v1516_v54 = vpop.xlane.xlu0 %1515 }
 0x9ac   : > { %vm1520_vm0 = vcmp.eq.f32.partialorder %v2843_v25, %v1516_v54 }
 0x9ad   : > { %v1607_v55 = vsel %vm1520_vm0, -1e+30, %v1476_v38  ;;  %v2106_v7 = vsel %vm1520_vm0, 1.0, %v2599_v45 }
 0x9ae   : > { %v1635_v56 = vsel %vm716_vm3, %v1607_v55, -inf }
 0x9af   : > { %1636 = vmax.xlane.f32.xlu0 %v1635_v56  ;;  %v1519_v57 = vpop.xlane.xlu0 %1518 }
 0x9b0   : > { %vm1521_vm2 = vcmp.eq.f32.partialorder %v2843_v25, %v1519_v57 }
 0x9b1   : > { %v1608_v32 = vsel %vm1521_vm2, -1e+30, %v1477_v41  ;;  %v2107_v8 = vsel %vm1521_vm2, 1.0, %v2599_v45 }
 0x9b2   : > { %v1638_v59 = vsel %vm716_vm3, %v1608_v32, -inf }
 0x9b3   : > { %1639 = vmax.xlane.f32.xlu0 %v1638_v59 }
 0xa18   : > { %v2178_v60 = vpop.f32.mrb[0].mxu1 }
 0xa19   : > { %v626_v62 = vpop.f32.mrb[1].mxu1 }
 0xa1a   : > { %v2240_v63 = vpack.c.bf16 %v2178_v60, %v626_v62 }
 0xa1c   : > { %2241 = vmatprep.subr.bf16.mxu1 %v2240_v63  ;;  %2245 = vmatprep.subr.bf16.mxu0 %v2240_v63 }
 0xa1d   : > { %2243 = vmatpush3.bf16.msra.mxu1 %v2240_v63  ;;  %2247 = vmatpush3.bf16.msra.mxu0 %v2240_v63 }
 0xa1e   : > { %2249 = vmatprep.subr.bf16.mxu1 %v2240_v63  ;;  %2253 = vmatprep.subr.bf16.mxu0 %v2240_v63 }
 0xa20   : > { %2189 = vmatmul.mubr.msk.f32.vlgmr.msra.gmra.mrb[2].mxu1 %vm716_vm3, %v2083_v0  ;;  %2196 = vmatmul.mubr.msk.f32.vlgmr.msra.gmra.mrb[4].mxu0 %vm716_vm3, %v2087_v2 }
 0xa21   : > { %2251 = vmatpush3.bf16.msra.mxu1 %v2240_v63  ;;  %2202 = vmatprep.mubr.msk.f32.mxu1 %vm716_vm3, %v2090_v3 }
 0xa22   : > { %2255 = vmatpush3.bf16.msra.mxu0 %v2240_v63  ;;  %2209 = vmatprep.mubr.msk.f32.mxu0 %vm716_vm3, %v2094_v35 }
 0xa23   : > { %2257 = vmatprep.subr.bf16.mxu1 %v2240_v63  ;;  %2261 = vmatprep.subr.bf16.mxu0 %v2240_v63 }
 0xa24   : > { %2203 = vmatmul.mubr.msk.f32.vlgmr.msra.gmra.mrb[4].mxu1 %vm716_vm3, %v2091_v49 }
 0xa25   : > { %2210 = vmatmul.mubr.msk.f32.vlgmr.msra.gmra.mrb[6].mxu0 %vm716_vm3, %v2095_v58  ;;  %2259 = vmatpush3.bf16.msra.mxu1 %v2240_v63 }
 0xa26   : > { %2216 = vmatprep.mubr.msk.f32.mxu1 %vm716_vm3, %v2098_v4  ;;  %2263 = vmatpush3.bf16.msra.mxu0 %v2240_v63 }
 0xa27   : > { %2223 = vmatprep.mubr.msk.f32.mxu0 %vm716_vm3, %v2102_v61  ;;  %2265 = vmatprep.subr.bf16.mxu1 %v2240_v63 }
 0xa28   : > { %2217 = vmatmul.mubr.msk.f32.vlgmr.msra.gmra.mrb[6].mxu1 %vm716_vm3, %v2099_v5  ;;  %2269 = vmatprep.subr.bf16.mxu0 %v2240_v63 }
 0xa29   : > { %2224 = vmatmul.mubr.msk.f32.vlgmr.msra.gmra.mrb[8].mxu0 %vm716_vm3, %v2103_v6  ;;  %2267 = vmatpush3.bf16.msra.mxu1 %v2240_v63 }
 0xa2a   : > { %2230 = vmatprep.mubr.msk.f32.mxu1 %vm716_vm3, %v2106_v7  ;;  %2271 = vmatpush3.bf16.msra.mxu0 %v2240_v63 }
 0xa2c   : > { %2231 = vmatmul.mubr.msk.f32.vlgmr.msra.gmra.mrb[8].mxu1 %vm716_vm3, %v2107_v8 }
 0xa3c   : > { %v1637_v9 = vpop.xlane.xlu0 %1636 }
 0xa3d   : > { %vm1641_vm1 = vcmp.ge.f32.partialorder %v1607_v55, %v1637_v9 }
 0xa3e   : > { %v1643_v10 = vsel %vm1641_vm1, %v2843_v25, 16.0 }
 0xa3f   : > { %v1645_v11 = vsel %vm716_vm3, %v1643_v10, inf }
 0xa40   : > { %1646 = vmin.xlane.f32.xlu0 %v1645_v11  ;;  %v1640_v12 = vpop.xlane.xlu0 %1639 }
 0xa41   : > { %vm1642_vm6 = vcmp.ge.f32.partialorder %v1608_v32, %v1640_v12 }
 0xa42   : > { %v1644_v13 = vsel %vm1642_vm6, %v2843_v25, 16.0 }
 0xa43   : > { %v1648_v14 = vsel %vm716_vm3, %v1644_v13, inf }
 0xa44   : > { %1649 = vmin.xlane.f32.xlu0 %v1648_v14 }
 0xacd   : > { %v1647_v15 = vpop.xlane.xlu0 %1646 }
 0xace   : > { %vm1651_vm7 = vcmp.eq.f32.partialorder %v2843_v25, %v1647_v15 }
 0xacf   : > { %v2110_v16 = vsel %vm1651_vm7, 1.0, %v2599_v45 }
 0xad0   : > { %2237 = vmatprep.mubr.msk.f32.mxu0 %vm716_vm3, %v2110_v16 }
 0xad1   : > { %v1650_v17 = vpop.xlane.xlu0 %1649 }
 0xad2   : > { %vm1652_vm11 = vcmp.eq.f32.partialorder %v2843_v25, %v1650_v17 }
 0xad3   : > { %v2111_v18 = vsel %vm1652_vm11, 1.0, %v2599_v45 }
 0xad4   : > { %2238 = vmatmul.mubr.msk.f32.vlgmr.msra.gmra.mrb[10].mxu0 %vm716_vm3, %v2111_v18 }
 0xaf3   : > { %v2190_v21 = vpop.f32.mrb[2].mxu1  ;;  %v2197_v22 = vpop.f32.mrb[4].mxu0 }
 0xaf4   : > { %v817_v24 = vadd.f32 %v2190_v21, %v2836_v19  ;;  %v949_v26 = vadd.f32 %v2197_v22, %v2836_v19  ;;  %v811_v27 = vpop.f32.mrb[3].mxu1  ;;  %v943_v28 = vpop.f32.mrb[5].mxu0 }
 0xaf5   : > { %v812_v29 = vadd.f32 %v811_v27, %v2838_v20  ;;  %v944_v30 = vadd.f32 %v943_v28, %v2838_v20 }
 0xaf6   : > { %v823_v31 = vmax.f32 %v817_v24, -1e+30  ;;  %v825_v33 = vmin.f32 %v817_v24, 1e+30  ;;  %v828_v25 = vsel %vm826_vm14, %v817_v24, 0.0  ;;  %v838_v45 = vmul.f32 %v817_v24, %v817_v24 }
 0xaf7   : > { %v959_v34 = vsel %vm826_vm14, %v949_v26, 0.0  ;;  %v969_v36 = vmul.f32 %v949_v26, %v949_v26  ;;  %v822_v37 = vmax.f32 %v812_v29, -1e+30  ;;  %v824_v38 = vmin.f32 %v812_v29, 1e+30  ;;  %v2204_v39 = vpop.f32.mrb[4].mxu1 }
 0xaf8   : > { %v840_v40 = vsel %vm826_vm14, %v838_v45, 0.0  ;;  %v955_v41 = vmax.f32 %v823_v31, %v949_v26  ;;  %v957_v42 = vmin.f32 %v825_v33, %v949_v26  ;;  %v827_v43 = vsel %vm826_vm14, %v812_v29, 0.0  ;;  %v2211_v44 = vpop.f32.mrb[6].mxu0  ;;  %v1074_v46 = vpop.f32.mrb[5].mxu1 }
 0xaf9   : > { %v971_v47 = vsel %vm826_vm14, %v969_v36, 0.0  ;;  %v829_v48 = vadd.f32 %v828_v25, %v827_v43  ;;  %v837_v50 = vmul.f32 %v812_v29, %v812_v29  ;;  %v954_v1 = vmax.f32 %v822_v37, %v944_v30  ;;  %v1205_v51 = vpop.f32.mrb[7].mxu0 }
 0xafa   : > { %v956_v52 = vmin.f32 %v824_v38, %v944_v30  ;;  %v958_v53 = vsel %vm826_vm14, %v944_v30, 0.0  ;;  %v968_v54 = vmul.f32 %v944_v30, %v944_v30  ;;  %v1080_v55 = vadd.f32 %v2204_v39, %v2836_v19 }
 0xafb   : > { %v830_v56 = vrot.slane %v829_v48, 4  ;;  %v839_v57 = vsel %vm826_vm14, %v837_v50, 0.0  ;;  %v960_v32 = vadd.f32 %v959_v34, %v958_v53  ;;  %v1211_v59 = vadd.f32 %v2211_v44, %v2836_v19  ;;  %v2218_v60 = vpop.f32.mrb[6].mxu1 }
 0xafc   : > { %v841_v62 = vadd.f32 %v840_v40, %v839_v57  ;;  %v970_v63 = vsel %vm826_vm14, %v968_v54, 0.0  ;;  %v1086_v0 = vmax.f32 %v955_v41, %v1080_v55  ;;  %v1088_v2 = vmin.f32 %v957_v42, %v1080_v55  ;;  %v3068_v3 = vpop.f32.mrb[8].mxu0  ;;  %v3070_v35 = vpop.f32.mrb[7].mxu1 }
 0xafd   : > { %v831_v49 = vadd.f32 %v830_v56, %v829_v48  ;;  %v961_v58 = vrot.slane %v960_v32, 4  ;;  %v972_v4 = vadd.f32 %v971_v47, %v970_v63  ;;  %v1090_v61 = vsel %vm826_vm14, %v1080_v55, 0.0  ;;  %v3073_v5 = vpop.f32.mrb[9].mxu0 }
 0xafe   : > { %v842_v6 = vrot.slane %v841_v62, 4  ;;  %v1100_v7 = vmul.f32 %v1080_v55, %v1080_v55  ;;  %v3075_v8 = vmax.f32 %v1086_v0, %v1211_v59  ;;  %v3077_v9 = vmin.f32 %v1088_v2, %v1211_v59 }
 0xaff   : > { %v832_v10 = vrot.slane %v831_v49, 2  ;;  %v962_v11 = vadd.f32 %v961_v58, %v960_v32  ;;  %v973_v12 = vrot.slane %v972_v4, 4  ;;  %v1221_v13 = vsel %vm826_vm14, %v1211_v59, 0.0  ;;  %v3080_v14 = vpop.f32.mrb[8].mxu1 }
 0xb00   : > { %v843_v15 = vadd.f32 %v842_v6, %v841_v62  ;;  %v1102_v16 = vsel %vm826_vm14, %v1100_v7, 0.0  ;;  %v1231_v17 = vmul.f32 %v1211_v59, %v1211_v59  ;;  %v1075_v18 = vadd.f32 %v1074_v46, %v2838_v20  ;;  %v3084_v21 = vpop.f32.mrb[9].mxu1 }
 0xb01   : > { %v833_v22 = vadd.f32 %v832_v10, %v831_v49  ;;  %v963_v24 = vrot.slane %v962_v11, 2  ;;  %v974_v26 = vadd.f32 %v973_v12, %v972_v4  ;;  %v1206_v27 = vadd.f32 %v1205_v51, %v2838_v20 }
 0xb02   : > { %v844_v28 = vrot.slane %v843_v15, 2  ;;  %v1233_v29 = vsel %vm826_vm14, %v1231_v17, 0.0  ;;  %v1085_v30 = vmax.f32 %v954_v1, %v1075_v18  ;;  %v1087_v31 = vmin.f32 %v956_v52, %v1075_v18 }
 0xb03   : > { %v834_v33 = vrot.slane %v833_v22, 1  ;;  %v964_v25 = vadd.f32 %v963_v24, %v962_v11  ;;  %v975_v45 = vrot.slane %v974_v26, 2  ;;  %v1089_v34 = vsel %vm826_vm14, %v1075_v18, 0.0 }
 0xb04   : > { %v845_v36 = vadd.f32 %v844_v28, %v843_v15  ;;  %v1091_v37 = vadd.f32 %v1090_v61, %v1089_v34  ;;  %v1099_v38 = vmul.f32 %v1075_v18, %v1075_v18  ;;  %v3089_v39 = vmax.f32 %v1085_v30, %v1206_v27 }
 0xb05   : > { %v835_v40 = vadd.f32 %v834_v33, %v833_v22  ;;  %v965_v41 = vrot.slane %v964_v25, 1  ;;  %v976_v42 = vadd.f32 %v975_v45, %v974_v26  ;;  %v3091_v43 = vmin.f32 %v1087_v31, %v1206_v27 }
 0xb06   : > { %v846_v44 = vrot.slane %v845_v36, 1  ;;  %v1092_v46 = vrot.slane %v1091_v37, 4  ;;  %v1101_v47 = vsel %vm826_vm14, %v1099_v38, 0.0  ;;  %v1220_v48 = vsel %vm826_vm14, %v1206_v27, 0.0 }
 0xb07   : > { %v966_v50 = vadd.f32 %v965_v41, %v964_v25  ;;  %v977_v1 = vrot.slane %v976_v42, 1  ;;  %v1103_v51 = vadd.f32 %v1102_v16, %v1101_v47  ;;  %v1222_v52 = vadd.f32 %v1221_v13, %v1220_v48 }
 0xb08   : > { %v847_v53 = vadd.f32 %v846_v44, %v845_v36  ;;  %v1093_v54 = vadd.f32 %v1092_v46, %v1091_v37  ;;  %v1230_v55 = vmul.f32 %v1206_v27, %v1206_v27  ;;  %v1342_v56 = vadd.f32 %v2218_v60, %v2836_v19 }
 0xb09   : > { %v967_v57 = vadd.f32 %v966_v50, %v835_v40  ;;  %v978_v32 = vadd.f32 %v977_v1, %v976_v42  ;;  %v1104_v59 = vrot.slane %v1103_v51, 4  ;;  %v1223_v62 = vrot.slane %v1222_v52, 4 }
 0xb0a   : > { %v1094_v63 = vrot.slane %v1093_v54, 2  ;;  %v1232_v0 = vsel %vm826_vm14, %v1230_v55, 0.0  ;;  %v1348_v2 = vmax.f32 %v3075_v8, %v1342_v56  ;;  %v1350_v49 = vmin.f32 %v3077_v9, %v1342_v56 }
 0xb0b   : > { %v979_v58 = vadd.f32 %v978_v32, %v847_v53  ;;  %v1105_v4 = vadd.f32 %v1104_v59, %v1103_v51  ;;  %v1224_v61 = vadd.f32 %v1223_v62, %v1222_v52  ;;  %v1234_v6 = vadd.f32 %v1233_v29, %v1232_v0 }
 0xb0c   : > { %v1095_v7 = vadd.f32 %v1094_v63, %v1093_v54  ;;  %v1352_v10 = vsel %vm826_vm14, %v1342_v56, 0.0  ;;  %v1362_v11 = vmul.f32 %v1342_v56, %v1342_v56  ;;  %v1473_v60 = vadd.f32 %v3068_v3, %v2836_v19 }
 0xb0d   : > { %v1106_v12 = vrot.slane %v1105_v4, 2  ;;  %v1225_v13 = vrot.slane %v1224_v61, 2  ;;  %v1235_v15 = vrot.slane %v1234_v6, 4  ;;  %v1337_v16 = vadd.f32 %v3070_v35, %v2838_v20 }
 0xb0e   : > { %v1096_v8 = vrot.slane %v1095_v7, 1  ;;  %v1364_v9 = vsel %vm826_vm14, %v1362_v11, 0.0  ;;  %v3105_v17 = vmax.f32 %v1348_v2, %v1473_v60  ;;  %v3107_v18 = vmin.f32 %v1350_v49, %v1473_v60 }
 0xb0f   : > { %v1107_v22 = vadd.f32 %v1106_v12, %v1105_v4  ;;  %v1226_v24 = vadd.f32 %v1225_v13, %v1224_v61  ;;  %v1236_v26 = vadd.f32 %v1235_v15, %v1234_v6  ;;  %v1483_v27 = vsel %vm826_vm14, %v1473_v60, 0.0 }
 0xb10   : > { %v1097_v28 = vadd.f32 %v1096_v8, %v1095_v7  ;;  %v1493_v3 = vmul.f32 %v1473_v60, %v1473_v60  ;;  %v1347_v29 = vmax.f32 %v3089_v39, %v1337_v16  ;;  %v1349_v30 = vmin.f32 %v3091_v43, %v1337_v16 }
 0xb11   : > { %v1108_v31 = vrot.slane %v1107_v22, 1  ;;  %v1227_v35 = vrot.slane %v1226_v24, 1  ;;  %v1237_v33 = vrot.slane %v1236_v26, 2  ;;  %v1351_v25 = vsel %vm826_vm14, %v1337_v16, 0.0 }
 0xb12   : > { %v1098_v45 = vadd.f32 %v1097_v28, %v967_v57  ;;  %v1495_v34 = vsel %vm826_vm14, %v1493_v3, 0.0  ;;  %v1353_v36 = vadd.f32 %v1352_v10, %v1351_v25  ;;  %v1361_v37 = vmul.f32 %v1337_v16, %v1337_v16 }
 0xb13   : > { %v1109_v38 = vadd.f32 %v1108_v31, %v1107_v22  ;;  %v1228_v40 = vadd.f32 %v1227_v35, %v1226_v24  ;;  %v1238_v41 = vadd.f32 %v1237_v33, %v1236_v26  ;;  %v1468_v42 = vadd.f32 %v3073_v5, %v2838_v20 }
 0xb14   : > { %v1354_v44 = vrot.slane %v1353_v36, 4  ;;  %v1363_v39 = vsel %vm826_vm14, %v1361_v37, 0.0  ;;  %v3119_v43 = vadd.f32 %v3080_v14, %v2836_v19  ;;  %v3123_v46 = vadd.f32 %v3084_v21, %v2838_v20 }
 0xb15   : > { %v1110_v47 = vadd.f32 %v1109_v38, %v979_v58  ;;  %v1229_v48 = vadd.f32 %v1228_v40, %v1098_v45  ;;  %v1239_v50 = vrot.slane %v1238_v41, 1  ;;  %v1365_v1 = vadd.f32 %v1364_v9, %v1363_v39 }
 0xb16   : > { %v1355_v51 = vadd.f32 %v1354_v44, %v1353_v36  ;;  %v3125_v52 = vmax.f32 %v1347_v29, %v1468_v42  ;;  %v3127_v53 = vmin.f32 %v1349_v30, %v1468_v42  ;;  %v1482_v5 = vsel %vm826_vm14, %v1468_v42, 0.0 }
 0xb17   : > { %v1240_v54 = vadd.f32 %v1239_v50, %v1238_v41  ;;  %v1366_v55 = vrot.slane %v1365_v1, 4  ;;  %v1484_v56 = vadd.f32 %v1483_v27, %v1482_v5  ;;  %v1492_v14 = vmul.f32 %v1468_v42, %v1468_v42 }
 0xb18   : > { %v1356_v57 = vrot.slane %v1355_v51, 2  ;;  %v1610_v21 = vmax.f32 %v3105_v17, %v3119_v43  ;;  %v1612_v32 = vmin.f32 %v3107_v18, %v3119_v43  ;;  %v1614_v59 = vsel %vm826_vm14, %v3119_v43, 0.0 }
 0xb19   : > { %v1241_v62 = vadd.f32 %v1240_v54, %v1110_v47  ;;  %v1367_v63 = vadd.f32 %v1366_v55, %v1365_v1  ;;  %v1485_v0 = vrot.slane %v1484_v56, 4  ;;  %v1494_v2 = vsel %vm826_vm14, %v1492_v14, 0.0 }
 0xb1a   : > { %v1357_v49 = vadd.f32 %v1356_v57, %v1355_v51  ;;  %v1496_v58 = vadd.f32 %v1495_v34, %v1494_v2  ;;  %v1624_v4 = vmul.f32 %v3119_v43, %v3119_v43  ;;  %v1609_v61 = vmax.f32 %v3125_v52, %v3123_v46 }
 0xb1b   : > { %v1368_v6 = vrot.slane %v1367_v63, 2  ;;  %v1486_v7 = vadd.f32 %v1485_v0, %v1484_v56  ;;  %v1611_v10 = vmin.f32 %v3127_v53, %v3123_v46  ;;  %v1613_v11 = vsel %vm826_vm14, %v3123_v46, 0.0 }
 0xb1c   : > { %v1358_v60 = vrot.slane %v1357_v49, 1  ;;  %v1497_v12 = vrot.slane %v1496_v58, 4  ;;  %v1615_v13 = vadd.f32 %v1614_v59, %v1613_v11  ;;  %v1626_v8 = vsel %vm826_vm14, %v1624_v4, 0.0 }
 0xb1d   : > { %v1369_v15 = vadd.f32 %v1368_v6, %v1367_v63  ;;  %v1487_v16 = vrot.slane %v1486_v7, 2  ;;  %v1623_v9 = vmul.f32 %v3123_v46, %v3123_v46 }
 0xb1e   : > { %v1359_v22 = vadd.f32 %v1358_v60, %v1357_v49  ;;  %v1498_v24 = vadd.f32 %v1497_v12, %v1496_v58  ;;  %v1616_v26 = vrot.slane %v1615_v13, 4 }
 0xb1f   : > { %v1370_v27 = vrot.slane %v1369_v15, 1  ;;  %v1488_v28 = vadd.f32 %v1487_v16, %v1486_v7  ;;  %v1625_v3 = vsel %vm826_vm14, %v1623_v9, 0.0 }
 0xb20   : > { %v1360_v29 = vadd.f32 %v1359_v22, %v1229_v48  ;;  %v1499_v30 = vrot.slane %v1498_v24, 2  ;;  %v1617_v31 = vadd.f32 %v1616_v26, %v1615_v13  ;;  %v1627_v35 = vadd.f32 %v1626_v8, %v1625_v3 }
 0xb21   : > { %v1371_v33 = vadd.f32 %v1370_v27, %v1369_v15  ;;  %v1489_v25 = vrot.slane %v1488_v28, 1 }
 0xb22   : > { %v1500_v45 = vadd.f32 %v1499_v30, %v1498_v24  ;;  %v1618_v34 = vrot.slane %v1617_v31, 2  ;;  %v1628_v36 = vrot.slane %v1627_v35, 4 }
 0xb23   : > { %v1490_v37 = vadd.f32 %v1489_v25, %v1488_v28  ;;  %v1372_v38 = vadd.f32 %v1371_v33, %v1241_v62 }
 0xb24   : > { %v1501_v40 = vrot.slane %v1500_v45, 1  ;;  %v1619_v41 = vadd.f32 %v1618_v34, %v1617_v31  ;;  %v1629_v42 = vadd.f32 %v1628_v36, %v1627_v35 }
 0xb25   : > { %v1491_v44 = vadd.f32 %v1490_v37, %v1360_v29 }
 0xb26   : > { %v1502_v39 = vadd.f32 %v1501_v40, %v1500_v45  ;;  %v1620_v46 = vrot.slane %v1619_v41, 1  ;;  %v1630_v47 = vrot.slane %v1629_v42, 2 }
 0xb28   : > { %v1621_v48 = vadd.f32 %v1620_v46, %v1619_v41  ;;  %v1631_v50 = vadd.f32 %v1630_v47, %v1629_v42  ;;  %v1503_v1 = vadd.f32 %v1502_v39, %v1372_v38 }
 0xb2a   : > { %v1632_v51 = vrot.slane %v1631_v50, 1  ;;  %v3149_v52 = vadd.f32 %v1621_v48, %v1491_v44 }
 0xb2c   : > { %v1633_v53 = vadd.f32 %v1632_v51, %v1631_v50 }
 0xb2e   : > { %v3151_v5 = vadd.f32 %v1633_v53, %v1503_v1 }
 0xba7   : > { %v2239_v54 = vpop.f32.mrb[10].mxu0 }
 0xba8   : > { %v1735_v55 = vadd.f32 %v2239_v54, %v2836_v19  ;;  %v1729_v56 = vpop.f32.mrb[11].mxu0 }
 0xba9   : > { %v1730_v14 = vadd.f32 %v1729_v56, %v2838_v20 }
 0xbaa   : > { %v1739_v57 = vmax.f32 %v1610_v21, %v1735_v55  ;;  %v1741_v59 = vmin.f32 %v1612_v32, %v1735_v55  ;;  %v1743_v62 = vsel %vm826_vm14, %v1735_v55, 0.0  ;;  %v1753_v63 = vmul.f32 %v1735_v55, %v1735_v55 }
 0xbab   : > { %v1738_v19 = vmax.f32 %v1609_v61, %v1730_v14  ;;  %v1740_v20 = vmin.f32 %v1611_v10, %v1730_v14  ;;  %v1742_v0 = vsel %vm826_vm14, %v1730_v14, 0.0  ;;  %v1752_v2 = vmul.f32 %v1730_v14, %v1730_v14 }
 0xbac   : > { %v1755_v17 = vsel %vm826_vm14, %v1753_v63, 0.0  ;;  %v3174_v18 = vadd.f32 %v1743_v62, %v1742_v0  ;;  %1767 = vst.msk [vmem:[%s367_s28 + $0x8] sm:$0xff] %vm826_vm14, %v1741_v59  ;;  %1765 = vst.msk [vmem:[%s360_s20 + $0x8] sm:$0xff] %vm826_vm14, %v1739_v57 }
 0xbad   : > { %v1754_v43 = vsel %vm826_vm14, %v1752_v2, 0.0  ;;  %1766 = vst.msk [vmem:[%s367_s28] sm:$0xff] %vm826_vm14, %v1740_v20  ;;  %1764 = vst.msk [vmem:[%s360_s20] sm:$0xff] %vm826_vm14, %v1738_v19 }
 0xbae   : > { %v1745_v21 = vrot.slane %v3174_v18, 4  ;;  %v1756_v32 = vadd.f32 %v1755_v17, %v1754_v43 }
 0xbaf   : > { %2430 = shalt.err (!%p2427_p2)
}
 0xbb0   : > { %s2431_s30 = scalar_lea.hbm %s3168_s12, 256  ;;  %s2435_s20 = scalar_lea.hbm %s3347_s5, 512 }
 0xbb1   : > { %p2432_p9 = scmp.ne.s32.totalorder %s3168_s12, %s2431_s30  ;;  %p2436_p6 = scmp.lt.u32.totalorder %s3168_s12, %s3347_s5 }
 0xbb2   : > { %p2437_p13 = scmp.lt.u32.totalorder %s2435_s20, %s2431_s30  ;;  %p2439_p8 = scmp.lt.u32.totalorder %s2431_s30, %s3168_s12 }
 0xbb3   : > { %p2433_p11 = pnand %p2432_p9, %p3373_p0 }
 0xbb4   : > { %p2438_p5 = por %p2437_p13, %p2436_p6 }
 0xbb5   : > { %p2434_p3 = pneg %p2433_p11 }
 0xbb6   : > { %p2440_p7 = por %p2439_p8, %p2438_p5 }
 0xbb8   : > { %p2441_p4 = pnand %p2440_p7, %p2434_p3 }
 0xbba   : > { %2444 = shalt.err (!%p2441_p4)
}
 0xbbb   : > { %s2601_s11 = smov 128   ;;  %s2602_s23 = smov 8  }
 0xbbc   : > { %2277 = dma.vmem_to_hbm [thread:$0]  (%p3373_p0), %s3171_s18, 256, %s3168_s12, %s3191_s22, %s2601_s11, %s2601_s11, %s2602_s23  }
 0xbbd   : > { %s1776_s21 = scalar_lea.sflag [#allocation4], %s2806_s10  ;;  %s2445_s0 = scalar_lea.vmem %s3183_s9, 256 }
 0xbbe   : > { %p2446_p10 = scmp.ne.s32.totalorder %s3183_s9, %s2445_s0  ;;  %s2603_s30 = smov [#allocation7]  }
 0xbbf   : > { %s2449_s17 = sshll.u32 %s2603_s30, 4  ;;  %s2450_s17 = int_to_ptr.vmem [resolvable:$false] %s2449_s17 }
 0xbc0   : > { %p2447_p12 = pnand %p2446_p10, %p3373_p0  ;;  %s2451_s28 = scalar_lea.vmem %s2450_s17, 512 }
 0xbc1   : > { %p2452_p2 = scmp.lt.s32.totalorder %s3183_s9, %s2450_s17  ;;  %p2453_p9 = scmp.lt.s32.totalorder %s2451_s28, %s2445_s0 }
 0xbc2   : > { %p2448_p1 = pneg %p2447_p12 }
 0xbc3   : > { %p2454_p11 = por %p2453_p9, %p2452_p2 }
 0xbc5   : > { %p2455_p3 = pnand %p2454_p11, %p2448_p1 }
 0xbc7   : > { %2458 = shalt.err (!%p2455_p3)
}
 0xbc8   : > { %s2459_s18 = scalar_lea.hbm %s3181_s13, 256  ;;  %s2463_s19 = scalar_lea.hbm %s3346_s4, 512 }
 0xbc9   : > { %p2460_p6 = scmp.ne.s32.totalorder %s3181_s13, %s2459_s18  ;;  %p2464_p8 = scmp.lt.u32.totalorder %s3181_s13, %s3346_s4 }
 0xbca   : > { %p2465_p7 = scmp.lt.u32.totalorder %s2463_s19, %s2459_s18  ;;  %p2467_p10 = scmp.lt.u32.totalorder %s2459_s18, %s3181_s13 }
 0xbcb   : > { %p2461_p13 = pnand %p2460_p6, %p3373_p0 }
 0xbcc   : > { %p2466_p4 = por %p2465_p7, %p2464_p8 }
 0xbcd   : > { %p2462_p5 = pneg %p2461_p13 }
 0xbce   : > { %p2468_p12 = por %p2467_p10, %p2466_p4 }
 0xbd0   : > { %p2469_p1 = pnand %p2468_p12, %p2462_p5 }
 0xbd2   : > { %2472 = shalt.err (!%p2469_p1)
}
 0xbd3   : > { %2276 = dma.vmem_to_hbm [thread:$0]  (%p3373_p0), %s3183_s9, 256, %s3181_s13, %s1776_s21, %s2601_s11, %s2601_s11, %s2602_s23   ;;  %v1746_v49 = vadd.f32 %v1745_v21, %v3174_v18  ;;  %v1757_v58 = vrot.slane %v1756_v32, 4  ;;  %v1769_v10 = vshrl.u32 %v713_v23, 7 }
 0xbd4   : > { %s2071_s0 = sshll.u32 %s2806_s10, 3  ;;  %s2122_s17 = sshll.u32 %s2587_s27, 7 }
 0xbd5   : > { %v1747_v4 = vrot.slane %v1746_v49, 2  ;;  %v1758_v61 = vadd.f32 %v1757_v58, %v1756_v32  ;;  %s374_s28 = scalar_lea.vmem [#allocation10], %s2071_s0  ;;  %vm1770_vm3 = vcmp.eq.s32.totalorder %v1769_v10, 0  ;;  %s3250_s9 = scalar_lea.vmem [#allocation11], %s2071_s0 }
 0xbd6   : > { %s1841_s18 = sshll.u32 %s374_s28, 4  ;;  %s1855_s13 = sshll.u32 %s3250_s9, 4  ;;  %s3258_s18 = int_to_ptr.vmem [resolvable:$true] %s1841_s18  ;;  %s3268_s13 = int_to_ptr.vmem [resolvable:$true] %s1855_s13 }
 0xbd7   : > { %v1748_v6 = vadd.f32 %v1747_v4, %v1746_v49  ;;  %v1759_v7 = vrot.slane %v1758_v61, 2  ;;  %s3256_s21 = scalar_lea.hbm %s3348_s6, %s2122_s17  ;;  %s3266_s20 = scalar_lea.hbm %s3349_s7, %s2122_s17 }
 0xbd8   : > { %s2473_s19 = scalar_lea.vmem %s3258_s18, 128  ;;  %s2604_s8 = smov [#allocation10]  }
 0xbd9   : > { %v1749_v11 = vrot.slane %v1748_v6, 1  ;;  %v1760_v60 = vadd.f32 %v1759_v7, %v1758_v61  ;;  %p2474_p2 = scmp.ne.s32.totalorder %s3258_s18, %s2473_s19  ;;  %s2477_s30 = sshll.u32 %s2604_s8, 4  ;;  %s2478_s30 = int_to_ptr.vmem [resolvable:$false] %s2477_s30 }
 0xbda   : > { %s2479_s0 = scalar_lea.vmem %s2478_s30, 256  ;;  %p2480_p3 = scmp.lt.s32.totalorder %s3258_s18, %s2478_s30 }
 0xbdb   : > { %v1750_v12 = vadd.f32 %v1749_v11, %v1748_v6  ;;  %v1761_v13 = vrot.slane %v1760_v60, 1  ;;  %p2475_p9 = pnand %p2474_p2, %p3373_p0  ;;  %p2481_p6 = scmp.lt.s32.totalorder %s2479_s0, %s2473_s19 }
 0xbdd   : > { %v1751_v15 = vadd.f32 %v1750_v12, %v3149_v52  ;;  %v1762_v16 = vadd.f32 %v1761_v13, %v1760_v60  ;;  %p2476_p11 = pneg %p2475_p9  ;;  %p2482_p13 = por %p2481_p6, %p2480_p3 }
 0xbdf   : > { %v1771_v23 = vsel %vm1770_vm3, %v1751_v15, 0.0  ;;  %v1763_v8 = vadd.f32 %v1762_v16, %v3151_v5  ;;  %p2483_p5 = pnand %p2482_p13, %p2476_p11 }
 0xbe0   : > { %1772 = vst.msk [vmem:[%s374_s28] sm:$0xff] %vm826_vm14, %v1771_v23 }
 0xbe1   : > { %2486 = shalt.err (!%p2483_p5)
}
 0xbe2   : > { %s2487_s17 = scalar_lea.hbm %s3256_s21, 128  ;;  %s2491_s23 = scalar_lea.hbm %s3348_s6, 256 }
 0xbe3   : > { %p2488_p8 = scmp.ne.s32.totalorder %s3256_s21, %s2487_s17  ;;  %p2492_p10 = scmp.lt.u32.totalorder %s3256_s21, %s3348_s6 }
 0xbe4   : > { %p2493_p12 = scmp.lt.u32.totalorder %s2491_s23, %s2487_s17  ;;  %p2495_p2 = scmp.lt.u32.totalorder %s2487_s17, %s3256_s21 }
 0xbe5   : > { %p2489_p7 = pnand %p2488_p8, %p3373_p0 }
 0xbe6   : > { %p2494_p1 = por %p2493_p12, %p2492_p10 }
 0xbe7   : > { %p2490_p4 = pneg %p2489_p7 }
 0xbe8   : > { %p2496_p9 = por %p2495_p2, %p2494_p1 }
 0xbea   : > { %p2497_p11 = pnand %p2496_p9, %p2490_p4 }
 0xbec   : > { %2500 = shalt.err (!%p2497_p11)
}
 0xbed   : > { %2278 = dma.vmem_to_hbm [thread:$0]  (%p3373_p0), %s3258_s18, 128, %s3256_s21, %s3191_s22   ;;  %v1773_v9 = vsel %vm1770_vm3, %v1763_v8, 0.0 }
 0xbee   : > { %1774 = vst.msk [vmem:[%s3250_s9] sm:$0xff] %vm826_vm14, %v1773_v9  ;;  %s1791_s19 = scalar_lea.sflag [#allocation12], %s2806_s10  ;;  %s2501_s8 = scalar_lea.vmem %s3268_s13, 128 }
 0xbef   : > { %p2502_p3 = scmp.ne.s32.totalorder %s3268_s13, %s2501_s8  ;;  %s2605_s30 = smov [#allocation11]  }
 0xbf0   : > { %s2505_s0 = sshll.u32 %s2605_s30, 4  ;;  %s2506_s0 = int_to_ptr.vmem [resolvable:$false] %s2505_s0 }
 0xbf1   : > { %p2503_p6 = pnand %p2502_p3, %p3373_p0  ;;  %s2507_s17 = scalar_lea.vmem %s2506_s0, 256 }
 0xbf2   : > { %p2508_p5 = scmp.lt.s32.totalorder %s3268_s13, %s2506_s0  ;;  %p2509_p8 = scmp.lt.s32.totalorder %s2507_s17, %s2501_s8 }
 0xbf3   : > { %p2504_p13 = pneg %p2503_p6 }
 0xbf4   : > { %p2510_p7 = por %p2509_p8, %p2508_p5 }
 0xbf6   : > { %p2511_p4 = pnand %p2510_p7, %p2504_p13 }
 0xbf8   : > { %2514 = shalt.err (!%p2511_p4)
}
 0xbf9   : > { %s2515_s10 = scalar_lea.hbm %s3266_s20, 128  ;;  %s2519_s9 = scalar_lea.hbm %s3349_s7, 256 }
 0xbfa   : > { %p2516_p10 = scmp.ne.s32.totalorder %s3266_s20, %s2515_s10  ;;  %p2520_p2 = scmp.lt.u32.totalorder %s3266_s20, %s3349_s7 }
 0xbfb   : > { %p2521_p9 = scmp.lt.u32.totalorder %s2519_s9, %s2515_s10  ;;  %p2523_p3 = scmp.lt.u32.totalorder %s2515_s10, %s3266_s20 }
 0xbfc   : > { %p2517_p12 = pnand %p2516_p10, %p3373_p0 }
 0xbfd   : > { %p2522_p11 = por %p2521_p9, %p2520_p2 }
 0xbfe   : > { %p2518_p1 = pneg %p2517_p12 }
 0xbff   : > { %p2524_p6 = por %p2523_p3, %p2522_p11 }
 0xc01   : > { %p2525_p13 = pnand %p2524_p6, %p2518_p1 }
 0xc03   : > { %2528 = shalt.err (!%p2525_p13)
}
 0xc04   : > { %2279 = dma.vmem_to_hbm [thread:$0]  (%p3373_p0), %s3268_s13, 128, %s3266_s20, %s1791_s19  }
 0xc05 PF: > { %s1867_s11 = sand.u32 1, %s2575_s24   ;;  %p3374_p5 = scmp.ne.s32.totalorder %s3363_s16, 0 }
 0xc06   : > { %p3375_p8 = scmp.ge.s32.totalorder %s2595_s29, 2  ;;  %s1868_s23 = scalar_lea.sflag [#allocation4], %s1867_s11 }
 0xc08   : > { %p2292_p7 = pnand %p3375_p8, %p3374_p5 }
 0xc0a   : > { %2562 = dma.done.wait (!%p2292_p7), %s1868_s23, 256  }
 0xc0b   : > { %2564 = vsyncadd (!%p2292_p7), %s1868_s23, 4294967040  ;;  %s3376_s27 = sadd.s32 4294967294, %s2595_s29  }
 0xc0c   : > { %s1876_s12 = sand.u32 1, %s3376_s27  }
 0xc0d   : > { %s1877_s8 = scalar_lea.sflag [#allocation9], %s1876_s12 }
 0xc0e   : > { %2566 = dma.done.wait (!%p2292_p7), %s1877_s8, 384  }
 0xc0f   : > { %2568 = vsyncadd (!%p2292_p7), %s1877_s8, 4294966912  ;;  %s1895_s14 = scalar_lea.sflag [#allocation12], %s1867_s11 }
 0xc10   : > { %2570 = dma.done.wait (!%p2292_p7), %s1895_s14, 128  }
 0xc11   : > { %2572 = vsyncadd (!%p2292_p7), %s1895_s14, 4294967168  ;;  %s33_s29 = sadd.s32 1, %s2595_s29   ;;  %s3377_s27 = sld [smem:[#allocation18_spill]] }
 0xc12   : > { %p30_p0 = scmp.ge.s32.totalorder %s33_s29, 4   ;;  %s3378_s28 = sld [smem:[#allocation19_spill]] }
 0xc13   : > { %s3379_s24 = smov %s2579_s25  ;;  %s3380_s25 = smov %s2583_s26 }
 0xc14   : > { %s3381_s26 = smov %s2708_s15  ;;  %32 = sbr.rel (!%p30_p0) target bundleno = 14 (0xe), region = 143 }
 0xc1b   :  { %1900 = vsyncpa [#allocation3], 1 }
 0xc1c   :  { %1902 = vsyncpa [#allocation3 + $0x1], 1 }
 0xc1d   :  { %1903 = vsyncpa [#allocation6], 1 }
 0xc1e   :  { %1905 = vsyncpa [#allocation6 + $0x1], 1 }
 0xc1f   :  { %1906 = vsyncpa [#allocation4], 1 }
 0xc20   :  { %1908 = vsyncpa [#allocation4 + $0x1], 1 }
 0xc21   :  { %1909 = vsyncpa [#allocation9], 1 }
 0xc22   :  { %1911 = vsyncpa [#allocation9 + $0x1], 1 }
 0xc23   :  { %1912 = vsyncpa [#allocation12], 1 }
 0xc24   :  { %1914 = vsyncpa [#allocation12 + $0x1], 1 }

</bundles_post_ra>
